<compile_context>
chip_gen: v5e
topology: v5e:2x2
jax: 0.10.0
libtpu: 0.0.40
codegen_flags: <defaults>
</compile_context>

<pallas_src>
import jax
import jax.numpy as jnp
from jax.experimental import pallas as pl
from jax.experimental.pallas import tpu as pltpu


def _round_up(n, m):
    return ((n + m - 1) // m) * m


# -----------------------------------------------------------------------------
# Fused kernel: grid = (batch_tiles, total_blocks). Block axis carries the
# residual; per-block weights arrive via the grid pipeline (double-buffered).
# -----------------------------------------------------------------------------
def _nbeats_fused_kernel(x_ref,
                         w1, b1, w2, b2, w3, b3, w4, b4,
                         wb_f, bgb, wf_f, bgf,
                         fore_ref, xres_ref):
    blk = pl.program_id(1)

    @pl.when(blk == 0)
    def _():
        # New batch tile: seed the residual and zero the forecast accumulator.
        xres_ref[...] = x_ref[...]
        fore_ref[...] = jnp.zeros_like(fore_ref)

    x = xres_ref[...]                                   # (BT, D_pad) f32

    # 4-layer ReLU MLP: bf16 operands on the MXU, f32 accumulate / elementwise.
    h = jnp.maximum(
        jnp.dot(x.astype(jnp.bfloat16), w1[...],
                preferred_element_type=jnp.float32) + b1[...], 0.0)
    h = jnp.maximum(
        jnp.dot(h.astype(jnp.bfloat16), w2[...],
                preferred_element_type=jnp.float32) + b2[...], 0.0)
    h = jnp.maximum(
        jnp.dot(h.astype(jnp.bfloat16), w3[...],
                preferred_element_type=jnp.float32) + b3[...], 0.0)
    h = jnp.maximum(
        jnp.dot(h.astype(jnp.bfloat16), w4[...],
                preferred_element_type=jnp.float32) + b4[...], 0.0)
    hb = h.astype(jnp.bfloat16)

    # Pre-folded projections: back = h @ (wb@wgb) + bgb ; fore = h @ (wf@wgf) + bgf
    back = jnp.dot(hb, wb_f[...], preferred_element_type=jnp.float32) + bgb[...]
    fore = jnp.dot(hb, wf_f[...], preferred_element_type=jnp.float32) + bgf[...]

    xres_ref[...] = x - back                            # residual for next block
    fore_ref[...] = fore_ref[...] + fore                # global forecast accumulator


# -----------------------------------------------------------------------------
# Parameter init (PyTorch nn.Linear-style uniform init), f32, unpadded.
# -----------------------------------------------------------------------------
def init_block_params(key, input_dim, output_dim, width):
    ks = jax.random.split(key, 8)

    def lin(k, fan_in, fan_out, bias=True):
        bound = 1.0 / float(fan_in) ** 0.5
        kw, kb = jax.random.split(k)
        w = jax.random.uniform(kw, (fan_in, fan_out), jnp.float32, -bound, bound)
        b = (jax.random.uniform(kb, (1, fan_out), jnp.float32, -bound, bound)
             if bias else None)
        return w, b

    p = {}
    p["w1"], p["b1"] = lin(ks[0], input_dim, width)
    p["w2"], p["b2"] = lin(ks[1], width, width)
    p["w3"], p["b3"] = lin(ks[2], width, width)
    p["w4"], p["b4"] = lin(ks[3], width, width)
    p["wb"], _ = lin(ks[4], width, width, bias=False)
    p["wf"], _ = lin(ks[5], width, width, bias=False)
    p["wgb"], p["bgb"] = lin(ks[6], width, input_dim)
    p["wgf"], p["bgf"] = lin(ks[7], width, output_dim)
    return p


def init_nbeats_params(key, n_stacks, n_blocks, input_dim, output_dim, width):
    keys = jax.random.split(key, n_stacks * n_blocks)
    params, idx = [], 0
    for _ in range(n_stacks):
        stack_p = []
        for _ in range(n_blocks):
            stack_p.append(init_block_params(keys[idx], input_dim, output_dim, width))
            idx += 1
        params.append(stack_p)
    return params


def pack_nbeats_params(params, input_dim, output_dim):
    """Stack per-block weights along a leading block axis, fold wb@wgb / wf@wgf,
    pad feature dims to lane multiples, and cast matmul weights to bf16."""
    D_pad = _round_up(input_dim, 128)
    O_pad = _round_up(output_dim, 128)
    flat = [p for stack in params for p in stack]

    packed = {
        "w1": jnp.stack([jnp.pad(p["w1"], ((0, D_pad - input_dim), (0, 0)))
                         for p in flat]).astype(jnp.bfloat16),
        "b1": jnp.stack([p["b1"] for p in flat]).astype(jnp.float32),
        "w2": jnp.stack([p["w2"] for p in flat]).astype(jnp.bfloat16),
        "b2": jnp.stack([p["b2"] for p in flat]).astype(jnp.float32),
        "w3": jnp.stack([p["w3"] for p in flat]).astype(jnp.bfloat16),
        "b3": jnp.stack([p["b3"] for p in flat]).astype(jnp.float32),
        "w4": jnp.stack([p["w4"] for p in flat]).astype(jnp.bfloat16),
        "b4": jnp.stack([p["b4"] for p in flat]).astype(jnp.float32),
        # Algebraic fold (f32 matmul at pack time, then bf16 for streaming).
        "wb_f": jnp.stack([jnp.pad(p["wb"] @ p["wgb"],
                                   ((0, 0), (0, D_pad - input_dim)))
                           for p in flat]).astype(jnp.bfloat16),
        "bgb": jnp.stack([jnp.pad(p["bgb"], ((0, 0), (0, D_pad - input_dim)))
                          for p in flat]).astype(jnp.float32),
        "wf_f": jnp.stack([jnp.pad(p["wf"] @ p["wgf"],
                                   ((0, 0), (0, O_pad - output_dim)))
                           for p in flat]).astype(jnp.bfloat16),
        "bgf": jnp.stack([jnp.pad(p["bgf"], ((0, 0), (0, O_pad - output_dim)))
                          for p in flat]).astype(jnp.float32),
    }
    return packed


# -----------------------------------------------------------------------------
# Forward pass (matches NBeats.forward: view(-1, 590), per-block residual,
# per-stack forecast sum, [0:280] batch slice, sum over stacks).
# Summing per-stack sums == summing all block forecasts, done in-kernel.
# -----------------------------------------------------------------------------
def nbeats_forward(x, packed, *, input_dim=590, output_dim=1, batch_tile=None):
    B = x.shape[0]
    x = x.reshape(B, input_dim).astype(jnp.float32)   # x.view(len(x), 590)

    NB = packed["w1"].shape[0]
    D_pad = packed["w1"].shape[1]
    W = packed["w1"].shape[2]
    O_pad = packed["wf_f"].shape[2]

    if batch_tile is None:
        batch_tile = 256 if B >= 256 else max(8, _round_up(B, 8))
    B_pad = _round_up(max(B, batch_tile), batch_tile)
    n_bt = B_pad // batch_tile

    x_pad = jnp.pad(x, ((0, B_pad - B), (0, D_pad - input_dim)))

    def wspec(shape):
        # Per-block weight: leading block axis squeezed, selected by grid axis 1.
        return pl.BlockSpec((None,) + shape, lambda i, b: (b, 0, 0))

    in_specs = [
        pl.BlockSpec((batch_tile, D_pad), lambda i, b: (i, 0)),   # x
        wspec((D_pad, W)),  wspec((1, W)),                        # w1, b1
        wspec((W, W)),      wspec((1, W)),                        # w2, b2
        wspec((W, W)),      wspec((1, W)),                        # w3, b3
        wspec((W, W)),      wspec((1, W)),                        # w4, b4
        wspec((W, D_pad)),  wspec((1, D_pad)),                    # wb_f, bgb
        wspec((W, O_pad)),  wspec((1, O_pad)),                    # wf_f, bgf
    ]
    out_spec = pl.BlockSpec((batch_tile, O_pad), lambda i, b: (i, 0))

    fore = pl.pallas_call(
        _nbeats_fused_kernel,
        out_shape=jax.ShapeDtypeStruct((B_pad, O_pad), jnp.float32),
        grid_spec=pltpu.PrefetchScalarGridSpec(
            num_scalar_prefetch=0,
            grid=(n_bt, NB),
            in_specs=in_specs,
            out_specs=out_spec,
            scratch_shapes=[pltpu.VMEM((batch_tile, D_pad), jnp.float32)],
        ),
        compiler_params=pltpu.CompilerParams(
            dimension_semantics=("parallel", "arbitrary")),
    )(x_pad,
      packed["w1"], packed["b1"], packed["w2"], packed["b2"],
      packed["w3"], packed["b3"], packed["w4"], packed["b4"],
      packed["wb_f"], packed["bgb"], packed["wf_f"], packed["bgf"])

    out = fore[:B, :output_dim]   # drop batch / lane padding
    out = out[0:280]              # matches global_forecast[0:280] (batch-dim slice)
    return out


if __name__ == "__main__":
    # Small-but-consistent hyperparams (input_dim=590 is hardcoded by the view()).
    n_stacks, n_blocks = 4, 2
    input_dim, output_dim, width = 590, 1, 256
    batch = 4

    key = jax.random.PRNGKey(0)
    k_params, k_x = jax.random.split(key)
    params = init_nbeats_params(k_params, n_stacks, n_blocks,
                                input_dim, output_dim, width)
    packed = pack_nbeats_params(params, input_dim, output_dim)
    x = jax.random.normal(k_x, (batch, input_dim), jnp.float32)

    fwd = jax.jit(lambda xx: nbeats_forward(xx, packed,
                                            input_dim=input_dim,
                                            output_dim=output_dim))
    out = jax.block_until_ready(fwd(x))
    assert out.shape == (batch, output_dim), out.shape
    assert bool(jnp.all(jnp.isfinite(out)))
    print("KERNEL_OK")
</pallas_src>

<mosaic_0001>
module attributes {stable_mosaic.version = 11 : i64} {
  func.func @_nbeats_fused_kernel(%arg0: i32, %arg1: i32, %arg2: memref<8x640xf32, #tpu.memory_space<vmem>>, %arg3: memref<1x640x256xbf16, #tpu.memory_space<vmem>>, %arg4: memref<1x1x256xf32, #tpu.memory_space<vmem>>, %arg5: memref<1x256x256xbf16, #tpu.memory_space<vmem>>, %arg6: memref<1x1x256xf32, #tpu.memory_space<vmem>>, %arg7: memref<1x256x256xbf16, #tpu.memory_space<vmem>>, %arg8: memref<1x1x256xf32, #tpu.memory_space<vmem>>, %arg9: memref<1x256x256xbf16, #tpu.memory_space<vmem>>, %arg10: memref<1x1x256xf32, #tpu.memory_space<vmem>>, %arg11: memref<1x256x640xbf16, #tpu.memory_space<vmem>>, %arg12: memref<1x1x640xf32, #tpu.memory_space<vmem>>, %arg13: memref<1x256x128xbf16, #tpu.memory_space<vmem>>, %arg14: memref<1x1x128xf32, #tpu.memory_space<vmem>>, %arg15: memref<8x128xf32, #tpu.memory_space<vmem>>, %arg16: memref<8x640xf32, #tpu.memory_space<vmem>>) attributes {dimension_semantics = [#tpu.dimension_semantics<parallel>, #tpu.dimension_semantics<arbitrary>], iteration_bounds = array<i64: 1, 8>, scalar_prefetch = 0 : i64, scratch_operands = 1 : i64, tpu.core_type = #tpu.core_type<tc>, window_params = [{transform_indices = @transform_0, window_bounds = array<i64: 8, 640>}, {transform_indices = @transform_1, window_bounds = array<i64: 1, 640, 256>}, {transform_indices = @transform_2, window_bounds = array<i64: 1, 1, 256>}, {transform_indices = @transform_3, window_bounds = array<i64: 1, 256, 256>}, {transform_indices = @transform_4, window_bounds = array<i64: 1, 1, 256>}, {transform_indices = @transform_5, window_bounds = array<i64: 1, 256, 256>}, {transform_indices = @transform_6, window_bounds = array<i64: 1, 1, 256>}, {transform_indices = @transform_7, window_bounds = array<i64: 1, 256, 256>}, {transform_indices = @transform_8, window_bounds = array<i64: 1, 1, 256>}, {transform_indices = @transform_9, window_bounds = array<i64: 1, 256, 640>}, {transform_indices = @transform_10, window_bounds = array<i64: 1, 1, 640>}, {transform_indices = @transform_11, window_bounds = array<i64: 1, 256, 128>}, {transform_indices = @transform_12, window_bounds = array<i64: 1, 1, 128>}, {transform_indices = @transform_13, window_bounds = array<i64: 8, 128>}]} {
    %c0_i32 = arith.constant 0 : i32
    %0 = arith.cmpi eq, %arg1, %c0_i32 : i32
    %1 = arith.extui %0 : i1 to i32
    %c0_i32_0 = arith.constant 0 : i32
    %2 = arith.cmpi ne, %1, %c0_i32_0 : i32
    scf.if %2 {
      %c0_53 = arith.constant 0 : index
      %c0_54 = arith.constant 0 : index
      %64 = vector.load %arg2[%c0_53, %c0_54] : memref<8x640xf32, #tpu.memory_space<vmem>>, vector<8x640xf32>
      %c0_55 = arith.constant 0 : index
      %c0_56 = arith.constant 0 : index
      %65 = vector.load %arg16[%c0_55, %c0_56] : memref<8x640xf32, #tpu.memory_space<vmem>>, vector<8x640xf32>
      tpu.vector_store %arg16[%c0_55, %c0_56], %64 {strides = array<i32>} : memref<8x640xf32, #tpu.memory_space<vmem>>, vector<8x640xf32>,
      %cst_57 = arith.constant 0.000000e+00 : f32
      %66 = vector.broadcast %cst_57 : f32 to vector<8x128xf32>
      %c0_58 = arith.constant 0 : index
      %c0_59 = arith.constant 0 : index
      %67 = vector.load %arg15[%c0_58, %c0_59] : memref<8x128xf32, #tpu.memory_space<vmem>>, vector<8x128xf32>
      tpu.vector_store %arg15[%c0_58, %c0_59], %66 {strides = array<i32>} : memref<8x128xf32, #tpu.memory_space<vmem>>, vector<8x128xf32>,
    } else {
    }
    %c0 = arith.constant 0 : index
    %c0_1 = arith.constant 0 : index
    %3 = vector.load %arg16[%c0, %c0_1] : memref<8x640xf32, #tpu.memory_space<vmem>>, vector<8x640xf32>
    %4 = arith.truncf %3 : vector<8x640xf32> to vector<8x640xbf16>
    %c0_2 = arith.constant 0 : index
    %c0_3 = arith.constant 0 : index
    %c0_4 = arith.constant 0 : index
    %5 = vector.load %arg3[%c0_2, %c0_3, %c0_4] : memref<1x640x256xbf16, #tpu.memory_space<vmem>>, vector<1x640x256xbf16>
    %6 = vector.shape_cast %5 : vector<1x640x256xbf16> to vector<640x256xbf16>
    %cst = arith.constant dense<0.000000e+00> : vector<8x256xf32>
    %7 = tpu.matmul %4, %6, %cst {dimension_numbers = #tpu.dot_dimension_numbers<[1], [0], [0], [1], [0, 0, 1, 1], [], []>} : vector<8x640xbf16>, vector<640x256xbf16>, vector<8x256xf32> -> vector<8x256xf32>
    %c0_5 = arith.constant 0 : index
    %c0_6 = arith.constant 0 : index
    %c0_7 = arith.constant 0 : index
    %8 = vector.load %arg4[%c0_5, %c0_6, %c0_7] : memref<1x1x256xf32, #tpu.memory_space<vmem>>, vector<1x1x256xf32>
    %9 = vector.shape_cast %8 : vector<1x1x256xf32> to vector<1x256xf32>
    %10 = vector.broadcast %9 : vector<1x256xf32> to vector<8x256xf32>
    %11 = arith.addf %7, %10 : vector<8x256xf32>
    %cst_8 = arith.constant 0.000000e+00 : f32
    %12 = vector.broadcast %cst_8 : f32 to vector<8x256xf32>
    %13 = arith.maximumf %11, %12 : vector<8x256xf32>
    %14 = arith.truncf %13 : vector<8x256xf32> to vector<8x256xbf16>
    %c0_9 = arith.constant 0 : index
    %c0_10 = arith.constant 0 : index
    %c0_11 = arith.constant 0 : index
    %15 = vector.load %arg5[%c0_9, %c0_10, %c0_11] : memref<1x256x256xbf16, #tpu.memory_space<vmem>>, vector<1x256x256xbf16>
    %16 = vector.shape_cast %15 : vector<1x256x256xbf16> to vector<256x256xbf16>
    %cst_12 = arith.constant dense<0.000000e+00> : vector<8x256xf32>
    %17 = tpu.matmul %14, %16, %cst_12 {dimension_numbers = #tpu.dot_dimension_numbers<[1], [0], [0], [1], [0, 0, 1, 1], [], []>} : vector<8x256xbf16>, vector<256x256xbf16>, vector<8x256xf32> -> vector<8x256xf32>
    %c0_13 = arith.constant 0 : index
    %c0_14 = arith.constant 0 : index
    %c0_15 = arith.constant 0 : index
    %18 = vector.load %arg6[%c0_13, %c0_14, %c0_15] : memref<1x1x256xf32, #tpu.memory_space<vmem>>, vector<1x1x256xf32>
    %19 = vector.shape_cast %18 : vector<1x1x256xf32> to vector<1x256xf32>
    %20 = vector.broadcast %19 : vector<1x256xf32> to vector<8x256xf32>
    %21 = arith.addf %17, %20 : vector<8x256xf32>
    %cst_16 = arith.constant 0.000000e+00 : f32
    %22 = vector.broadcast %cst_16 : f32 to vector<8x256xf32>
    %23 = arith.maximumf %21, %22 : vector<8x256xf32>
    %24 = arith.truncf %23 : vector<8x256xf32> to vector<8x256xbf16>
    %c0_17 = arith.constant 0 : index
    %c0_18 = arith.constant 0 : index
    %c0_19 = arith.constant 0 : index
    %25 = vector.load %arg7[%c0_17, %c0_18, %c0_19] : memref<1x256x256xbf16, #tpu.memory_space<vmem>>, vector<1x256x256xbf16>
    %26 = vector.shape_cast %25 : vector<1x256x256xbf16> to vector<256x256xbf16>
    %cst_20 = arith.constant dense<0.000000e+00> : vector<8x256xf32>
    %27 = tpu.matmul %24, %26, %cst_20 {dimension_numbers = #tpu.dot_dimension_numbers<[1], [0], [0], [1], [0, 0, 1, 1], [], []>} : vector<8x256xbf16>, vector<256x256xbf16>, vector<8x256xf32> -> vector<8x256xf32>
    %c0_21 = arith.constant 0 : index
    %c0_22 = arith.constant 0 : index
    %c0_23 = arith.constant 0 : index
    %28 = vector.load %arg8[%c0_21, %c0_22, %c0_23] : memref<1x1x256xf32, #tpu.memory_space<vmem>>, vector<1x1x256xf32>
    %29 = vector.shape_cast %28 : vector<1x1x256xf32> to vector<1x256xf32>
    %30 = vector.broadcast %29 : vector<1x256xf32> to vector<8x256xf32>
    %31 = arith.addf %27, %30 : vector<8x256xf32>
    %cst_24 = arith.constant 0.000000e+00 : f32
    %32 = vector.broadcast %cst_24 : f32 to vector<8x256xf32>
    %33 = arith.maximumf %31, %32 : vector<8x256xf32>
    %34 = arith.truncf %33 : vector<8x256xf32> to vector<8x256xbf16>
    %c0_25 = arith.constant 0 : index
    %c0_26 = arith.constant 0 : index
    %c0_27 = arith.constant 0 : index
    %35 = vector.load %arg9[%c0_25, %c0_26, %c0_27] : memref<1x256x256xbf16, #tpu.memory_space<vmem>>, vector<1x256x256xbf16>
    %36 = vector.shape_cast %35 : vector<1x256x256xbf16> to vector<256x256xbf16>
    %cst_28 = arith.constant dense<0.000000e+00> : vector<8x256xf32>
    %37 = tpu.matmul %34, %36, %cst_28 {dimension_numbers = #tpu.dot_dimension_numbers<[1], [0], [0], [1], [0, 0, 1, 1], [], []>} : vector<8x256xbf16>, vector<256x256xbf16>, vector<8x256xf32> -> vector<8x256xf32>
    %c0_29 = arith.constant 0 : index
    %c0_30 = arith.constant 0 : index
    %c0_31 = arith.constant 0 : index
    %38 = vector.load %arg10[%c0_29, %c0_30, %c0_31] : memref<1x1x256xf32, #tpu.memory_space<vmem>>, vector<1x1x256xf32>
    %39 = vector.shape_cast %38 : vector<1x1x256xf32> to vector<1x256xf32>
    %40 = vector.broadcast %39 : vector<1x256xf32> to vector<8x256xf32>
    %41 = arith.addf %37, %40 : vector<8x256xf32>
    %cst_32 = arith.constant 0.000000e+00 : f32
    %42 = vector.broadcast %cst_32 : f32 to vector<8x256xf32>
    %43 = arith.maximumf %41, %42 : vector<8x256xf32>
    %44 = arith.truncf %43 : vector<8x256xf32> to vector<8x256xbf16>
    %c0_33 = arith.constant 0 : index
    %c0_34 = arith.constant 0 : index
    %c0_35 = arith.constant 0 : index
    %45 = vector.load %arg11[%c0_33, %c0_34, %c0_35] : memref<1x256x640xbf16, #tpu.memory_space<vmem>>, vector<1x256x640xbf16>
    %46 = vector.shape_cast %45 : vector<1x256x640xbf16> to vector<256x640xbf16>
    %cst_36 = arith.constant dense<0.000000e+00> : vector<8x640xf32>
    %47 = tpu.matmul %44, %46, %cst_36 {dimension_numbers = #tpu.dot_dimension_numbers<[1], [0], [0], [1], [0, 0, 1, 1], [], []>} : vector<8x256xbf16>, vector<256x640xbf16>, vector<8x640xf32> -> vector<8x640xf32>
    %c0_37 = arith.constant 0 : index
    %c0_38 = arith.constant 0 : index
    %c0_39 = arith.constant 0 : index
    %48 = vector.load %arg12[%c0_37, %c0_38, %c0_39] : memref<1x1x640xf32, #tpu.memory_space<vmem>>, vector<1x1x640xf32>
    %49 = vector.shape_cast %48 : vector<1x1x640xf32> to vector<1x640xf32>
    %50 = vector.broadcast %49 : vector<1x640xf32> to vector<8x640xf32>
    %51 = arith.addf %47, %50 : vector<8x640xf32>
    %c0_40 = arith.constant 0 : index
    %c0_41 = arith.constant 0 : index
    %c0_42 = arith.constant 0 : index
    %52 = vector.load %arg13[%c0_40, %c0_41, %c0_42] : memref<1x256x128xbf16, #tpu.memory_space<vmem>>, vector<1x256x128xbf16>
    %53 = vector.shape_cast %52 : vector<1x256x128xbf16> to vector<256x128xbf16>
    %cst_43 = arith.constant dense<0.000000e+00> : vector<8x128xf32>
    %54 = tpu.matmul %44, %53, %cst_43 {dimension_numbers = #tpu.dot_dimension_numbers<[1], [0], [0], [1], [0, 0, 1, 1], [], []>} : vector<8x256xbf16>, vector<256x128xbf16>, vector<8x128xf32> -> vector<8x128xf32>
    %c0_44 = arith.constant 0 : index
    %c0_45 = arith.constant 0 : index
    %c0_46 = arith.constant 0 : index
    %55 = vector.load %arg14[%c0_44, %c0_45, %c0_46] : memref<1x1x128xf32, #tpu.memory_space<vmem>>, vector<1x1x128xf32>
    %56 = vector.shape_cast %55 : vector<1x1x128xf32> to vector<1x128xf32>
    %57 = vector.broadcast %56 : vector<1x128xf32> to vector<8x128xf32>
    %58 = arith.addf %54, %57 : vector<8x128xf32>
    %59 = arith.subf %3, %51 : vector<8x640xf32>
    %c0_47 = arith.constant 0 : index
    %c0_48 = arith.constant 0 : index
    %60 = vector.load %arg16[%c0_47, %c0_48] : memref<8x640xf32, #tpu.memory_space<vmem>>, vector<8x640xf32>
    tpu.vector_store %arg16[%c0_47, %c0_48], %59 {strides = array<i32>} : memref<8x640xf32, #tpu.memory_space<vmem>>, vector<8x640xf32>,
    %c0_49 = arith.constant 0 : index
    %c0_50 = arith.constant 0 : index
    %61 = vector.load %arg15[%c0_49, %c0_50] : memref<8x128xf32, #tpu.memory_space<vmem>>, vector<8x128xf32>
    %62 = arith.addf %61, %58 : vector<8x128xf32>
    %c0_51 = arith.constant 0 : index
    %c0_52 = arith.constant 0 : index
    %63 = vector.load %arg15[%c0_51, %c0_52] : memref<8x128xf32, #tpu.memory_space<vmem>>, vector<8x128xf32>
    tpu.vector_store %arg15[%c0_51, %c0_52], %62 {strides = array<i32>} : memref<8x128xf32, #tpu.memory_space<vmem>>, vector<8x128xf32>,
    return
  }
  func.func @transform_0(%arg0: i32, %arg1: i32) -> (i32, i32) {
    %c0_i32 = arith.constant 0 : i32
    %c0_i32_0 = arith.constant 0 : i32
    return %arg0, %c0_i32 : i32, i32
  }
  func.func @transform_1(%arg0: i32, %arg1: i32) -> (i32, i32, i32) {
    %c0_i32 = arith.constant 0 : i32
    %c0_i32_0 = arith.constant 0 : i32
    %c0_i32_1 = arith.constant 0 : i32
    return %arg1, %c0_i32, %c0_i32_0 : i32, i32, i32
  }
  func.func @transform_2(%arg0: i32, %arg1: i32) -> (i32, i32, i32) {
    %c0_i32 = arith.constant 0 : i32
    %c0_i32_0 = arith.constant 0 : i32
    %c0_i32_1 = arith.constant 0 : i32
    return %arg1, %c0_i32, %c0_i32_0 : i32, i32, i32
  }
  func.func @transform_3(%arg0: i32, %arg1: i32) -> (i32, i32, i32) {
    %c0_i32 = arith.constant 0 : i32
    %c0_i32_0 = arith.constant 0 : i32
    %c0_i32_1 = arith.constant 0 : i32
    return %arg1, %c0_i32, %c0_i32_0 : i32, i32, i32
  }
  func.func @transform_4(%arg0: i32, %arg1: i32) -> (i32, i32, i32) {
    %c0_i32 = arith.constant 0 : i32
    %c0_i32_0 = arith.constant 0 : i32
    %c0_i32_1 = arith.constant 0 : i32
    return %arg1, %c0_i32, %c0_i32_0 : i32, i32, i32
  }
  func.func @transform_5(%arg0: i32, %arg1: i32) -> (i32, i32, i32) {
    %c0_i32 = arith.constant 0 : i32
    %c0_i32_0 = arith.constant 0 : i32
    %c0_i32_1 = arith.constant 0 : i32
    return %arg1, %c0_i32, %c0_i32_0 : i32, i32, i32
  }
  func.func @transform_6(%arg0: i32, %arg1: i32) -> (i32, i32, i32) {
    %c0_i32 = arith.constant 0 : i32
    %c0_i32_0 = arith.constant 0 : i32
    %c0_i32_1 = arith.constant 0 : i32
    return %arg1, %c0_i32, %c0_i32_0 : i32, i32, i32
  }
  func.func @transform_7(%arg0: i32, %arg1: i32) -> (i32, i32, i32) {
    %c0_i32 = arith.constant 0 : i32
    %c0_i32_0 = arith.constant 0 : i32
    %c0_i32_1 = arith.constant 0 : i32
    return %arg1, %c0_i32, %c0_i32_0 : i32, i32, i32
  }
  func.func @transform_8(%arg0: i32, %arg1: i32) -> (i32, i32, i32) {
    %c0_i32 = arith.constant 0 : i32
    %c0_i32_0 = arith.constant 0 : i32
    %c0_i32_1 = arith.constant 0 : i32
    return %arg1, %c0_i32, %c0_i32_0 : i32, i32, i32
  }
  func.func @transform_9(%arg0: i32, %arg1: i32) -> (i32, i32, i32) {
    %c0_i32 = arith.constant 0 : i32
    %c0_i32_0 = arith.constant 0 : i32
    %c0_i32_1 = arith.constant 0 : i32
    return %arg1, %c0_i32, %c0_i32_0 : i32, i32, i32
  }
  func.func @transform_10(%arg0: i32, %arg1: i32) -> (i32, i32, i32) {
    %c0_i32 = arith.constant 0 : i32
    %c0_i32_0 = arith.constant 0 : i32
    %c0_i32_1 = arith.constant 0 : i32
    return %arg1, %c0_i32, %c0_i32_0 : i32, i32, i32
  }
  func.func @transform_11(%arg0: i32, %arg1: i32) -> (i32, i32, i32) {
    %c0_i32 = arith.constant 0 : i32
    %c0_i32_0 = arith.constant 0 : i32
    %c0_i32_1 = arith.constant 0 : i32
    return %arg1, %c0_i32, %c0_i32_0 : i32, i32, i32
  }
  func.func @transform_12(%arg0: i32, %arg1: i32) -> (i32, i32, i32) {
    %c0_i32 = arith.constant 0 : i32
    %c0_i32_0 = arith.constant 0 : i32
    %c0_i32_1 = arith.constant 0 : i32
    return %arg1, %c0_i32, %c0_i32_0 : i32, i32, i32
  }
  func.func @transform_13(%arg0: i32, %arg1: i32) -> (i32, i32) {
    %c0_i32 = arith.constant 0 : i32
    %c0_i32_0 = arith.constant 0 : i32
    return %arg0, %c0_i32 : i32, i32
  }
}

</mosaic_0001>

<bundles_post_ra>
// kernel: _lambda_.1
= control target key start
LH: loop header
LB: loop body
LE: loop exit
PB: predicated region body
PF: predicated region fallthrough
CT: control target
= control target key end

     0   :  { %s6321_s0 = inlined_call_operand.vmem [shape: f32[8,640], index: 0, kind: input, shape index: {}]   ;;  %s6322_s1 = inlined_call_operand.hbm [shape: bf16[8,640,256], index: 1, kind: input, shape index: {}]   ;;  %s6323_s2 = inlined_call_operand.hbm [shape: f32[8,1,256], index: 2, kind: input, shape index: {}]   ;;  %s6324_s3 = inlined_call_operand.hbm [shape: bf16[8,256,256], index: 3, kind: input, shape index: {}]   ;;  %s6325_s4 = inlined_call_operand.hbm [shape: f32[8,1,256], index: 4, kind: input, shape index: {}]   ;;  %s6326_s5 = inlined_call_operand.hbm [shape: bf16[8,256,256], index: 5, kind: input, shape index: {}]   ;;  %s6327_s6 = inlined_call_operand.hbm [shape: f32[8,1,256], index: 6, kind: input, shape index: {}]   ;;  %s6328_s7 = inlined_call_operand.hbm [shape: bf16[8,256,256], index: 7, kind: input, shape index: {}]   ;;  %s6329_s8 = inlined_call_operand.hbm [shape: f32[8,1,256], index: 8, kind: input, shape index: {}]   ;;  %s6330_s9 = inlined_call_operand.hbm [shape: bf16[8,256,640], index: 9, kind: input, shape index: {}]   ;;  %s6331_s10 = inlined_call_operand.hbm [shape: f32[8,1,640], index: 10, kind: input, shape index: {}]   ;;  %s6332_s11 = inlined_call_operand.hbm [shape: bf16[8,256,128], index: 11, kind: input, shape index: {}]   ;;  %s6333_s12 = inlined_call_operand.hbm [shape: f32[8,1,128], index: 12, kind: input, shape index: {}]   ;;  %s6334_s13 = inlined_call_operand.vmem [shape: f32[8,128], index: 13, kind: output, shape index: {}]  }
   0x1   :  { %6349 = sst [smem:[#allocation34_spill]] %s6321_s0 }
   0x2   :  { %6350 = sst [smem:[#allocation35_spill]] %s6322_s1 }
   0x3   :  { %6351 = sst [smem:[#allocation36_spill]] %s6323_s2 }
   0x4   :  { %6352 = sst [smem:[#allocation37_spill]] %s6324_s3 }
   0x5   :  { %6353 = sst [smem:[#allocation38_spill]] %s6325_s4 }
   0x6   :  { %6354 = sst [smem:[#allocation39_spill]] %s6327_s6 }
   0x7   :  { %6355 = sst [smem:[#allocation40_spill]] %s6334_s13 }
   0x8   :  { %18 = vsyncpa [#allocation4], 0 }
   0x9   :  { %20 = vsyncpa [#allocation4 + $0x1], 0 }
   0xa   :  { %21 = vsyncpa [#allocation6], 0 }
   0xb   :  { %23 = vsyncpa [#allocation6 + $0x1], 0 }
   0xc   :  { %24 = vsyncpa [#allocation9], 0 }
   0xd   :  { %26 = vsyncpa [#allocation9 + $0x1], 0 }
   0xe   :  { %27 = vsyncpa [#allocation12], 0 }
   0xf   :  { %29 = vsyncpa [#allocation12 + $0x1], 0 }
  0x10   :  { %30 = vsyncpa [#allocation15], 0 }
  0x11   :  { %32 = vsyncpa [#allocation15 + $0x1], 0 }
  0x12   :  { %33 = vsyncpa [#allocation18], 0 }
  0x13   :  { %35 = vsyncpa [#allocation18 + $0x1], 0 }
  0x14   :  { %36 = vsyncpa [#allocation21], 0 }
  0x15   :  { %38 = vsyncpa [#allocation21 + $0x1], 0  ;;  %s5454_s25 = smov 0   ;;  %s5456_s26 = smov 0  }
  0x16   :  { %s5458_s27 = smov 0   ;;  %s5460_s28 = smov 0  }
  0x17   :  { %s5462_s29 = smov 0   ;;  %s5464_s30 = smov 0  }
  0x18 LB: > { %6356 = sst [smem:[#allocation29_spill]] %s5363_s27  ;;  %s6335_s14 = sadd.s32 4294967295, %s5375_s30   ;;  %s5375_s30 = sphi %s5464_s30, %s44_s30   ;;  %s5371_s29 = sphi %s5462_s29, %s6392_s29   ;;  %s5367_s28 = sphi %s5460_s28, %s6391_s28   ;;  %s5363_s27 = sphi %s5458_s27, %s6387_s27   ;;  %s5359_s26 = sphi %s5456_s26, %s6390_s26   ;;  %s5355_s25 = sphi %s5454_s25, %s6389_s25  }
  0x19   : > { %6357 = sst [smem:[#allocation30_spill]] %s5367_s28  ;;  %s53_s15 = sadd.s32 1, %s5371_s29 }
  0x1a   : > { %p54_p0 = scmp.ge.s32.totalorder %s53_s15, 8  ;;  %s89_s16 = sadd.s32 1, %s5363_s27 }
  0x1b   : > { %p96_p1 = scmp.ne.s32.totalorder %s5363_s27, %s5359_s26  ;;  %p97_p2 = scmp.eq.s32.totalorder %s5375_s30, 0 }
  0x1c   : > { %s6394_s15 = smov (%p54_p0, %s53_s15), 0  ;;  %p102_p4 = scmp.ne.s32.totalorder %s5359_s26, %s5355_s25 }
  0x1d   : > { %6358 = sst [smem:[#allocation31_spill]] %s6394_s15  ;;  %p5490_p3 = por %p97_p2, %p96_p1 }
  0x1e   : > { %s86_s18 = ssub.s32 %s5371_s29, %s6394_s15  ;;  %p103_p5 = scmp.eq.s32.totalorder %s6335_s14, 0 }
  0x1f   : > { %p87_p6 = scmp.eq.s32.totalorder %s86_s18, 0  ;;  %p3472_p8 = scmp.ge.s32.totalorder %s5375_s30, 8 }
  0x20   : > { %p5499_p7 = por %p103_p5, %p102_p4  ;;  %s5508_s21 = sand.u32 (!%p3472_p8), 1, %s5363_s27  }
  0x21   : > { %s5504_s20 = scalar_select %p87_p6, %s5363_s27, %s89_s16  }
  0x22   : > { %s6360_s19 = scalar_select %p5499_p7, 1, 0 }
  0x23   : > { %6362 = sst [smem:[#allocation33_spill]] %s5504_s20  ;;  %442 = sbr.rel (%p3472_p8) target bundleno = 91 (0x5b), region = 20 }
  0x24   : > { %6361 = sst [smem:[#allocation32_spill]] %s6360_s19  ;;  %s5511_s22 = sand.u32 (!%p3472_p8), 1, %s5375_s30  }
  0x25   : > { %s5514_s23 = sshll.u32 (!%p3472_p8), %s5508_s21, 1  ;;  %s3475_s24 = sshll.u32 (!%p3472_p8), %s5371_s29, 1 }
  0x26   : > { %s6363_s2 = sld [smem:[#allocation36_spill]] (!%p3472_p8)  ;;  %s472_s14 = scalar_lea.vmem (!%p3472_p8), [#allocation5], %s5514_s23 }
  0x27   : > { %s480_s15 = sshll.u32 (!%p3472_p8), %s472_s14, 4  ;;  %s6345_s27 = scalar_lea.sflag (!%p3472_p8), [#allocation6], %s5511_s22  ;;  %s481_s15 = int_to_ptr.vmem [resolvable:$true] %s480_s15 }
  0x28   : > { %s6364_s4 = sld [smem:[#allocation38_spill]]  ;;  %s513_s28 = scalar_lea.vmem [#allocation8], %s5514_s23 }
  0x29   : > { %s6342_s14 = scalar_lea.sflag [#allocation9], %s5511_s22  ;;  %s6365_s6 = sld [smem:[#allocation39_spill]] }
  0x2a   : > { %s554_s13 = scalar_lea.vmem [#allocation11], %s5514_s23  ;;  %s6366_s1 = sld [smem:[#allocation35_spill]] }
  0x2b   : > { %s6367_s3 = sld [smem:[#allocation37_spill]] }
  0x2c   : > { %s476_s18 = scalar_lea.hbm %s6363_s2, %s3475_s24  ;;  %s521_s2 = sshll.u32 %s513_s28, 4  ;;  %s522_s2 = int_to_ptr.vmem [resolvable:$true] %s521_s2 }
  0x2d   : > { %s478_s20 = sshll.u32 %s476_s18, 4  ;;  %s6343_s28 = scalar_lea.sflag [#allocation12], %s5511_s22  ;;  %s479_s20 = int_to_ptr.hbm [resolvable:$true] %s478_s20 }
  0x2e   : > { %4881 = dma.hbm_to_vmem [thread:$0]  (%p5490_p3), %s479_s20, 32, %s481_s15, %s6345_s27  }
  0x2f   : > { %s517_s25 = scalar_lea.hbm %s6364_s4, %s3475_s24  ;;  %s558_s0 = scalar_lea.hbm %s6365_s6, %s3475_s24 }
  0x30   : > { %s519_s16 = sshll.u32 %s517_s25, 4  ;;  %s562_s15 = sshll.u32 %s554_s13, 4  ;;  %s520_s16 = int_to_ptr.hbm [resolvable:$true] %s519_s16  ;;  %s563_s15 = int_to_ptr.vmem [resolvable:$true] %s562_s15 }
  0x31   : > { %4883 = dma.hbm_to_vmem [thread:$0]  (%p5490_p3), %s520_s16, 32, %s522_s2, %s6342_s14  }
  0x32   : > { %s560_s20 = sshll.u32 %s558_s0, 4  ;;  %s599_s16 = scalar_lea.hbm %s6329_s8, %s3475_s24  ;;  %s561_s20 = int_to_ptr.hbm [resolvable:$true] %s560_s20 }
  0x33   : > { %4885 = dma.hbm_to_vmem [thread:$0]  (%p5490_p3), %s561_s20, 32, %s563_s15, %s6343_s28  }
  0x34   : > { %s601_s19 = sshll.u32 %s599_s16, 4  ;;  %s595_s18 = scalar_lea.vmem [#allocation14], %s5514_s23  ;;  %s602_s19 = int_to_ptr.hbm [resolvable:$true] %s601_s19 }
  0x35   : > { %s603_s14 = sshll.u32 %s595_s18, 4  ;;  %s6344_s0 = scalar_lea.sflag [#allocation15], %s5511_s22  ;;  %s604_s14 = int_to_ptr.vmem [resolvable:$true] %s603_s14 }
  0x36   : > { %4887 = dma.hbm_to_vmem [thread:$0]  (%p5490_p3), %s602_s19, 32, %s604_s14, %s6344_s0  }
  0x37   : > { %s4876_s13 = smul.u32 5, %s5508_s21  ;;  %s6346_s28 = scalar_lea.sflag [#allocation18], %s5511_s22 }
  0x38   : > { %s4877_s15 = smul.u32 5, %s5371_s29  ;;  %s5377_s27 = smov 128  }
  0x39   : > { %s6347_s20 = smul.u32 640, %s5508_s21  ;;  %s636_s2 = scalar_lea.vmem [#allocation17], %s4876_s13 }
  0x3a   : > { %s640_s23 = scalar_lea.hbm %s6331_s10, %s4877_s15  ;;  %s644_s16 = sshll.u32 %s636_s2, 4  ;;  %s645_s16 = int_to_ptr.vmem [resolvable:$true] %s644_s16 }
  0x3b   : > { %s642_s18 = sshll.u32 %s640_s23, 4  ;;  %s6348_s14 = smul.u32 640, %s5371_s29  ;;  %s643_s18 = int_to_ptr.hbm [resolvable:$true] %s642_s18 }
  0x3c   : > { %4889 = dma.hbm_to_vmem [thread:$0]  (%p5490_p3), %s643_s18, 80, %s645_s16, %s6346_s28  }
  0x3d   : > { %s450_s19 = scalar_lea.vmem [#allocation3], %s6347_s20  ;;  %s455_s13 = scalar_lea.hbm %s6366_s1, %s6348_s14 }
  0x3e   : > { %s458_s0 = sshll.u32 %s450_s19, 4  ;;  %s456_s25 = sshll.u32 %s455_s13, 4  ;;  %s459_s0 = int_to_ptr.vmem [resolvable:$true] %s458_s0  ;;  %s457_s25 = int_to_ptr.hbm [resolvable:$true] %s456_s25 }
  0x3f   : > { %s3476_s23 = sshll.u32 %s5508_s21, 8  ;;  %s447_s2 = scalar_lea.sflag [#allocation4], %s5508_s21 }
  0x40   : > { %s5378_s4 = smov 8   ;;  %s4596_s16 = sshll.u32 %s5371_s29, 8 }
  0x41   : > { %4880 = dma.hbm_to_vmem [thread:$0]  (%p5490_p3), %s457_s25, 10240, %s459_s0, %s447_s2, %s5377_s27, %s5377_s27, %s5378_s4  }
  0x42   : > { %s491_s18 = scalar_lea.vmem [#allocation7], %s3476_s23  ;;  %s496_s24 = scalar_lea.hbm %s6367_s3, %s4596_s16 }
  0x43   : > { %s499_s19 = sshll.u32 %s491_s18, 4  ;;  %s497_s15 = sshll.u32 %s496_s24, 4  ;;  %s500_s19 = int_to_ptr.vmem [resolvable:$true] %s499_s19  ;;  %s498_s15 = int_to_ptr.hbm [resolvable:$true] %s497_s15 }
  0x44   : > { %s537_s1 = scalar_lea.hbm %s6326_s5, %s4596_s16  ;;  %s6368_s6 = scalar_lea.sflag [#allocation6], %s5511_s22 }
  0x45   : > { %4882 = dma.hbm_to_vmem [thread:$0]  (%p5490_p3), %s498_s15, 4096, %s500_s19, %s6368_s6, %s5377_s27, %s5377_s27, %s5378_s4  }
  0x46   : > { %s538_s0 = sshll.u32 %s537_s1, 4  ;;  %s532_s25 = scalar_lea.vmem [#allocation10], %s3476_s23  ;;  %s539_s0 = int_to_ptr.hbm [resolvable:$true] %s538_s0 }
  0x47   : > { %s540_s2 = sshll.u32 %s532_s25, 4  ;;  %s6369_s28 = scalar_lea.sflag [#allocation9], %s5511_s22  ;;  %s541_s2 = int_to_ptr.vmem [resolvable:$true] %s540_s2 }
  0x48   : > { %4884 = dma.hbm_to_vmem [thread:$0]  (%p5490_p3), %s539_s0, 4096, %s541_s2, %s6369_s28, %s5377_s27, %s5377_s27, %s5378_s4  }
  0x49   : > { %s578_s14 = scalar_lea.hbm %s6328_s7, %s4596_s16  ;;  %s573_s13 = scalar_lea.vmem [#allocation13], %s3476_s23 }
  0x4a   : > { %s579_s24 = sshll.u32 %s578_s14, 4  ;;  %s581_s6 = sshll.u32 %s573_s13, 4  ;;  %s580_s24 = int_to_ptr.hbm [resolvable:$true] %s579_s24  ;;  %s582_s6 = int_to_ptr.vmem [resolvable:$true] %s581_s6 }
  0x4b   : > { %s6370_s1 = scalar_lea.sflag [#allocation12], %s5511_s22  ;;  %s6371_s19 = smul.u32 640, %s5371_s29 }
  0x4c   : > { %4886 = dma.hbm_to_vmem [thread:$0]  (%p5490_p3), %s580_s24, 4096, %s582_s6, %s6370_s1, %s5377_s27, %s5377_s27, %s5378_s4  }
  0x4d   : > { %s619_s0 = scalar_lea.hbm %s6330_s9, %s6371_s19  ;;  %s6372_s28 = smul.u32 640, %s5508_s21 }
  0x4e   : > { %s620_s2 = sshll.u32 %s619_s0, 4  ;;  %s5379_s23 = smov 320   ;;  %s621_s2 = int_to_ptr.hbm [resolvable:$true] %s620_s2 }
  0x4f   : > { %s614_s20 = scalar_lea.vmem [#allocation16], %s6372_s28  ;;  %s5380_s16 = smov 20  }
  0x50   : > { %s622_s18 = sshll.u32 %s614_s20, 4  ;;  %s6373_s14 = scalar_lea.sflag [#allocation15], %s5511_s22  ;;  %s623_s18 = int_to_ptr.vmem [resolvable:$true] %s622_s18 }
  0x51   : > { %4888 = dma.hbm_to_vmem [thread:$0]  (%p5490_p3), %s621_s2, 10240, %s623_s18, %s6373_s14, %s5379_s23, %s5379_s23, %s5380_s16  }
  0x52   : > { %s3492_s4 = sshll.u32 %s5508_s21, 7  ;;  %s4599_s27 = sshll.u32 %s5371_s29, 7 }
  0x53   : > { %s660_s6 = scalar_lea.hbm %s6332_s11, %s4599_s27  ;;  %s655_s19 = scalar_lea.vmem [#allocation19], %s3492_s4 }
  0x54   : > { %s661_s1 = sshll.u32 %s660_s6, 4  ;;  %s663_s15 = sshll.u32 %s655_s19, 4  ;;  %s662_s1 = int_to_ptr.hbm [resolvable:$true] %s661_s1  ;;  %s664_s15 = int_to_ptr.vmem [resolvable:$true] %s663_s15 }
  0x55   : > { %s5381_s25 = smov 64   ;;  %s5382_s0 = smov 4  }
  0x56   : > { %s6374_s28 = scalar_lea.sflag [#allocation18], %s5511_s22  ;;  %s679_s18 = scalar_lea.hbm %s6333_s12, %s5371_s29 }
  0x57   : > { %4890 = dma.hbm_to_vmem [thread:$0]  (%p5490_p3), %s662_s1, 2048, %s664_s15, %s6374_s28, %s5381_s25, %s5381_s25, %s5382_s0  }
  0x58   : > { %s676_s23 = scalar_lea.vmem [#allocation20], %s5508_s21  ;;  %s681_s14 = sshll.u32 %s679_s18, 4  ;;  %s682_s14 = int_to_ptr.hbm [resolvable:$true] %s681_s14 }
  0x59   : > { %s683_s16 = sshll.u32 %s676_s23, 4  ;;  %s674_s27 = scalar_lea.sflag [#allocation21], %s5508_s21  ;;  %s684_s16 = int_to_ptr.vmem [resolvable:$true] %s683_s16 }
  0x5a   : > { %4891 = dma.hbm_to_vmem [thread:$0]  (%p5490_p3), %s682_s14, 16, %s684_s16, %s674_s27  }
  0x5b PF: > { %p3495_p9 = scmp.ge.s32.totalorder %s5375_s30, 1  ;;  %p688_p10 = scmp.lt.s32.totalorder %s5375_s30, 9 }
  0x5d   : > { %p689_p11 = pnand %p3495_p9, %p688_p10 }
  0x5e   : > { %s5629_s4 = sand.u32 (!%p689_p11), 1, %s5359_s26  }
  0x5f   : > { %692 = sbr.rel (%p689_p11) target bundleno = 961 (0x3c1), region = 72  ;;  %s695_s13 = scalar_lea.sflag (!%p689_p11), [#allocation4], %s5629_s4 }
  0x60   : > { %s4878_s24 = smul.u32 (!%p689_p11), 640, %s5629_s4 }
  0x62   : > { %s5633_s6 = scalar_lea.vmem (!%p689_p11), [#allocation3], %s4878_s24 }
  0x64   : > { %5326 = dma.done.wait (%p5499_p7), %s695_s13, 10240  }
  0x65   : > { %5328 = vsyncadd (%p5499_p7), %s695_s13, 4294957056  ;;  %s6376_s17 = sadd.s32 4294967295, %s5375_s30   ;;  %s5642_s1 = sshll.u32 %s5629_s4, 1 }
  0x66   : > { %s704_s21 = sand.u32 1, %s6376_s17  }
  0x67   : > { %s705_s19 = scalar_lea.sflag [#allocation6], %s704_s21 }
  0x68   : > { %5330 = dma.done.wait (%p5499_p7), %s705_s19, 4128  }
  0x69   : > { %5332 = vsyncadd (%p5499_p7), %s705_s19, 4294963168  ;;  %s3497_s25 = sshll.u32 %s5629_s4, 8  ;;  %s725_s28 = scalar_lea.sflag [#allocation9], %s704_s21 }
  0x6a   : > { %s5650_s0 = scalar_lea.vmem [#allocation7], %s3497_s25 }
  0x6b   : > { %5334 = dma.done.wait (%p5499_p7), %s725_s28, 4128  }
  0x6c   : > { %5336 = vsyncadd (%p5499_p7), %s725_s28, 4294963168  ;;  %s5657_s2 = scalar_lea.vmem [#allocation10], %s3497_s25  ;;  %s745_s18 = scalar_lea.sflag [#allocation12], %s704_s21 }
  0x6d   : > { %5338 = dma.done.wait (%p5499_p7), %s745_s18, 4128  }
  0x6e   : > { %5340 = vsyncadd (%p5499_p7), %s745_s18, 4294963168  ;;  %s5664_s16 = scalar_lea.vmem [#allocation13], %s3497_s25  ;;  %s765_s14 = scalar_lea.sflag [#allocation15], %s704_s21 }
  0x6f   : > { %5342 = dma.done.wait (%p5499_p7), %s765_s14, 10272  }
  0x70   : > { %5344 = vsyncadd (%p5499_p7), %s765_s14, 4294957024  ;;  %s4879_s13 = smul.u32 5, %s5629_s4  ;;  %s5672_s17 = scalar_lea.vmem [#allocation16], %s4878_s24 }
  0x71   : > { %s785_s19 = scalar_lea.sflag [#allocation18], %s704_s21 }
  0x72   : > { %s5674_s28 = scalar_lea.vmem [#allocation17], %s4879_s13 }
  0x73   : > { %5346 = dma.done.wait (%p5499_p7), %s785_s19, 2128  }
  0x74   : > { %5348 = vsyncadd (%p5499_p7), %s785_s19, 4294965168  ;;  %s3503_s25 = sshll.u32 %s5629_s4, 7  ;;  %s805_s14 = scalar_lea.sflag [#allocation21], %s5629_s4 }
  0x75   : > { %s5681_s18 = scalar_lea.vmem [#allocation19], %s3503_s25 }
  0x76   : > { %5350 = dma.done.wait (%p5499_p7), %s805_s14, 16  }
  0x77   : > { %5352 = vsyncadd (%p5499_p7), %s805_s14, 4294967280  ;;  %s6377_s24 = sld [smem:[#allocation30_spill]] }
  0x7d   : > { %p3504_p12 = scmp.ne.s32.totalorder %s6377_s24, 0 }
  0x7e   : > { %s6378_s19 = sld [smem:[#allocation34_spill]] (!%p3504_p12) }
  0x7f   : > { %921 = sbr.rel (%p3504_p12) target bundleno = 139 (0x8b), region = 124  ;;  %s6379_s24 = sld [smem:[#allocation40_spill]] (!%p3504_p12) }
  0x84   : > { %v922_v0 = vld [vmem:[%s6378_s19] sm:$0xff]  ;;  %v923_v1 = vld [vmem:[%s6378_s19 + $0x8] sm:$0xff]  ;;  %v924_v2 = vld [vmem:[%s6378_s19 + $0x10] sm:$0xff]  ;;  %v5383_v5 = vmov 0.0  }
  0x85   : > { %927 = vst [vmem:[#allocation2 + $0x8] sm:$0xff] %v922_v0  ;;  %v925_v3 = vld [vmem:[%s6378_s19 + $0x18] sm:$0xff]  ;;  %v926_v4 = vld [vmem:[%s6378_s19 + $0x20] sm:$0xff] }
  0x86   : > { %928 = vst [vmem:[#allocation2] sm:$0xff] %v923_v1 }
  0x87   : > { %929 = vst [vmem:[#allocation2 + $0x20] sm:$0xff] %v924_v2 }
  0x88   : > { %930 = vst [vmem:[#allocation2 + $0x10] sm:$0xff] %v925_v3 }
  0x89   : > { %931 = vst [vmem:[#allocation2 + $0x18] sm:$0xff] %v926_v4 }
  0x8a   : > { %932 = vst [vmem:[%s6379_s24] sm:$0xff] %v5383_v5 }
  0x8b PF: > { %v3563_v6 = vld [vmem:[%s5633_s6 + $0x70] sm:$0xf]  ;;  %v4615_v7 = vld [vmem:[%s5633_s6 + $0x74] sm:$0xf0]  ;;  %v3555_v11 = vld [vmem:[%s5633_s6 + $0x60] sm:$0xf] }
  0x8c   : > { %v3627_v8 = vld [vmem:[%s5633_s6 + $0xf0] sm:$0xf]  ;;  %v3564_v9 = vor.u32 %v4615_v7, %v3563_v6  ;;  %v4631_v10 = vld [vmem:[%s5633_s6 + $0xf4] sm:$0xf0]  ;;  %v4613_v12 = vld [vmem:[%s5633_s6 + $0x64] sm:$0xf0] }
  0x8d   : > { %v3628_v13 = vor.u32 %v4631_v10, %v3627_v8  ;;  %v3619_v14 = vld [vmem:[%s5633_s6 + $0xe0] sm:$0xf]  ;;  %v4629_v15 = vld [vmem:[%s5633_s6 + $0xe4] sm:$0xf0]  ;;  %v3556_v16 = vor.u32 %v4613_v12, %v3555_v11  ;;  %v3547_v17 = vld [vmem:[%s5633_s6 + $0x50] sm:$0xf] }
  0x8e   : > { %1429 = vmatpush.bf16.msra.mxu0 %v3564_v9  ;;  %v3620_v18 = vor.u32 %v4629_v15, %v3619_v14  ;;  %v4611_v19 = vld [vmem:[%s5633_s6 + $0x54] sm:$0xf0]  ;;  %v3691_v20 = vld [vmem:[%s5633_s6 + $0x170] sm:$0xf]  ;;  %v3683_v27 = vld [vmem:[%s5633_s6 + $0x160] sm:$0xf] }
  0x8f   : > { %1442 = vmatpush.bf16.msra.mxu1 %v3628_v13  ;;  %v4647_v21 = vld [vmem:[%s5633_s6 + $0x174] sm:$0xf0]  ;;  %v3611_v22 = vld [vmem:[%s5633_s6 + $0xd0] sm:$0xf]  ;;  %v3548_v28 = vor.u32 %v4611_v19, %v3547_v17  ;;  %v3539_v29 = vld [vmem:[%s5633_s6 + $0x40] sm:$0xf] }
  0x90   : > { %v4627_v23 = vld [vmem:[%s5633_s6 + $0xd4] sm:$0xf0]  ;;  %v3692_v24 = vor.u32 %v4647_v21, %v3691_v20  ;;  %v3755_v25 = vld [vmem:[%s5633_s6 + $0x1f0] sm:$0xf]  ;;  %v4609_v30 = vld [vmem:[%s5633_s6 + $0x44] sm:$0xf0] }
  0x91   : > { %v4663_v26 = vld [vmem:[%s5633_s6 + $0x1f4] sm:$0xf0]  ;;  %v4645_v32 = vld [vmem:[%s5633_s6 + $0x164] sm:$0xf0]  ;;  %v3612_v33 = vor.u32 %v4627_v23, %v3611_v22  ;;  %v3603_v34 = vld [vmem:[%s5633_s6 + $0xc0] sm:$0xf]  ;;  %v3540_v42 = vor.u32 %v4609_v30, %v3539_v29 }
  0x92   : > { %1430 = vmatpush.bf16.msra.mxu0 %v3556_v16  ;;  %1455 = vmatpush.bf16.msra.mxu2 %v3692_v24  ;;  %v3756_v31 = vor.u32 %v4663_v26, %v3755_v25  ;;  %v4625_v35 = vld [vmem:[%s5633_s6 + $0xc4] sm:$0xf0]  ;;  %v3684_v36 = vor.u32 %v4645_v32, %v3683_v27  ;;  %v3747_v37 = vld [vmem:[%s5633_s6 + $0x1e0] sm:$0xf]  ;;  %v3675_v39 = vld [vmem:[%s5633_s6 + $0x150] sm:$0xf] }
  0x93   : > { %1443 = vmatpush.bf16.msra.mxu1 %v3620_v18  ;;  %v4661_v38 = vld [vmem:[%s5633_s6 + $0x1e4] sm:$0xf0]  ;;  %v4643_v40 = vld [vmem:[%s5633_s6 + $0x154] sm:$0xf0]  ;;  %v3531_v43 = vld [vmem:[%s5633_s6 + $0x30] sm:$0xf]  ;;  %v3604_v47 = vor.u32 %v4625_v35, %v3603_v34 }
  0x94   : > { %1468 = vmatpush.bf16.msra.mxu3 %v3756_v31  ;;  %v3748_v41 = vor.u32 %v4661_v38, %v3747_v37  ;;  %v3676_v44 = vor.u32 %v4643_v40, %v3675_v39  ;;  %v3739_v45 = vld [vmem:[%s5633_s6 + $0x1d0] sm:$0xf]  ;;  %v4659_v46 = vld [vmem:[%s5633_s6 + $0x1d4] sm:$0xf0]  ;;  %v3667_v49 = vld [vmem:[%s5633_s6 + $0x140] sm:$0xf] }
  0x95   : > { %v4607_v48 = vld [vmem:[%s5633_s6 + $0x34] sm:$0xf0]  ;;  %v4641_v50 = vld [vmem:[%s5633_s6 + $0x144] sm:$0xf0]  ;;  %v3595_v51 = vld [vmem:[%s5633_s6 + $0xb0] sm:$0xf]  ;;  %v3740_v53 = vor.u32 %v4659_v46, %v3739_v45 }
  0x96   : > { %1431 = vmatpush.bf16.msra.mxu0 %v3548_v28  ;;  %1456 = vmatpush.bf16.msra.mxu2 %v3684_v36  ;;  %v4623_v52 = vld [vmem:[%s5633_s6 + $0xb4] sm:$0xf0]  ;;  %v3731_v54 = vld [vmem:[%s5633_s6 + $0x1c0] sm:$0xf]  ;;  %v4657_v55 = vld [vmem:[%s5633_s6 + $0x1c4] sm:$0xf0]  ;;  %v3532_v56 = vor.u32 %v4607_v48, %v3531_v43  ;;  %v3668_v58 = vor.u32 %v4641_v50, %v3667_v49 }
  0x97   : > { %1444 = vmatpush.bf16.msra.mxu1 %v3612_v33  ;;  %v3523_v57 = vld [vmem:[%s5633_s6 + $0x20] sm:$0xf]  ;;  %v3596_v59 = vor.u32 %v4623_v52, %v3595_v51  ;;  %v4605_v60 = vld [vmem:[%s5633_s6 + $0x24] sm:$0xf0]  ;;  %v3659_v61 = vld [vmem:[%s5633_s6 + $0x130] sm:$0xf]  ;;  %v3732_v1 = vor.u32 %v4657_v55, %v3731_v54 }
  0x98   : > { %1469 = vmatpush.bf16.msra.mxu3 %v3748_v41  ;;  %v4639_v62 = vld [vmem:[%s5633_s6 + $0x134] sm:$0xf0]  ;;  %v3587_v63 = vld [vmem:[%s5633_s6 + $0xa0] sm:$0xf]  ;;  %v4621_v0 = vld [vmem:[%s5633_s6 + $0xa4] sm:$0xf0]  ;;  %v3524_v4 = vor.u32 %v4605_v60, %v3523_v57 }
  0x99   : > { %v3723_v2 = vld [vmem:[%s5633_s6 + $0x1b0] sm:$0xf]  ;;  %v4655_v3 = vld [vmem:[%s5633_s6 + $0x1b4] sm:$0xf0]  ;;  %v3660_v6 = vor.u32 %v4639_v62, %v3659_v61  ;;  %v3588_v7 = vor.u32 %v4621_v0, %v3587_v63  ;;  %v3651_v9 = vld [vmem:[%s5633_s6 + $0x120] sm:$0xf] }
  0x9a   : > { %1432 = vmatpush.bf16.msra.mxu0 %v3540_v42  ;;  %1457 = vmatpush.bf16.msra.mxu2 %v3676_v44  ;;  %v3515_v5 = vld [vmem:[%s5633_s6 + $0x10] sm:$0xf]  ;;  %v4603_v8 = vld [vmem:[%s5633_s6 + $0x14] sm:$0xf0]  ;;  %v4637_v10 = vld [vmem:[%s5633_s6 + $0x124] sm:$0xf0]  ;;  %v3724_v13 = vor.u32 %v4655_v3, %v3723_v2 }
  0x9b   : > { %1445 = vmatpush.bf16.msra.mxu1 %v3604_v47  ;;  %v3579_v11 = vld [vmem:[%s5633_s6 + $0x90] sm:$0xf]  ;;  %v4619_v12 = vld [vmem:[%s5633_s6 + $0x94] sm:$0xf0]  ;;  %v3715_v14 = vld [vmem:[%s5633_s6 + $0x1a0] sm:$0xf]  ;;  %v3516_v16 = vor.u32 %v4603_v8, %v3515_v5  ;;  %v3652_v20 = vor.u32 %v4637_v10, %v3651_v9 }
  0x9c   : > { %1470 = vmatpush.bf16.msra.mxu3 %v3740_v53  ;;  %v4653_v15 = vld [vmem:[%s5633_s6 + $0x1a4] sm:$0xf0]  ;;  %v3507_v17 = vld [vmem:[%s5633_s6] sm:$0xf]  ;;  %v3580_v21 = vor.u32 %v4619_v12, %v3579_v11  ;;  %v3643_v23 = vld [vmem:[%s5633_s6 + $0x110] sm:$0xf] }
  0x9d   : > { %v4601_v18 = vld [vmem:[%s5633_s6 + $0x4] sm:$0xf0]  ;;  %v3571_v19 = vld [vmem:[%s5633_s6 + $0x80] sm:$0xf]  ;;  %v4635_v24 = vld [vmem:[%s5633_s6 + $0x114] sm:$0xf0]  ;;  %v3716_v28 = vor.u32 %v4653_v15, %v3715_v14 }
  0x9e   : > { %1433 = vmatpush.bf16.msra.mxu0 %v3532_v56  ;;  %1458 = vmatpush.bf16.msra.mxu2 %v3668_v58  ;;  %v4617_v22 = vld [vmem:[%s5633_s6 + $0x84] sm:$0xf0]  ;;  %v3819_v25 = vld [vmem:[%s5633_s6 + $0x270] sm:$0xf]  ;;  %v4679_v26 = vld [vmem:[%s5633_s6 + $0x274] sm:$0xf0]  ;;  %v3508_v32 = vor.u32 %v4601_v18, %v3507_v17  ;;  %v3644_v35 = vor.u32 %v4635_v24, %v3643_v23 }
  0x9f   : > { %1446 = vmatpush.bf16.msra.mxu1 %v3596_v59  ;;  %v4614_v27 = vld [vmem:[%s5633_s6 + $0x74] sm:$0xf]  ;;  %v3565_v29 = vld [vmem:[%s5633_s6 + $0x78] sm:$0xf0]  ;;  %v3707_v30 = vld [vmem:[%s5633_s6 + $0x190] sm:$0xf]  ;;  %v3572_v36 = vor.u32 %v4617_v22, %v3571_v19  ;;  %v3820_v37 = vor.u32 %v4679_v26, %v3819_v25 }
  0xa0   : > { %1471 = vmatpush.bf16.msra.mxu3 %v3732_v1  ;;  %v4651_v31 = vld [vmem:[%s5633_s6 + $0x194] sm:$0xf0]  ;;  %v3811_v33 = vld [vmem:[%s5633_s6 + $0x260] sm:$0xf]  ;;  %v4677_v34 = vld [vmem:[%s5633_s6 + $0x264] sm:$0xf0]  ;;  %v3568_v41 = vor.u32 %v4614_v27, %v3565_v29 }
  0xa1   : > { %v3635_v38 = vld [vmem:[%s5633_s6 + $0x100] sm:$0xf]  ;;  %v4633_v39 = vld [vmem:[%s5633_s6 + $0x104] sm:$0xf0]  ;;  %v4612_v42 = vld [vmem:[%s5633_s6 + $0x64] sm:$0xf]  ;;  %v3708_v43 = vor.u32 %v4651_v31, %v3707_v30  ;;  %v3812_v53 = vor.u32 %v4677_v34, %v3811_v33 }
  0xa2   : > { %1434 = vmatpush.bf16.msra.mxu0 %v3524_v4  ;;  %1459 = vmatpush.bf16.msra.mxu2 %v3660_v6  ;;  %v933_v40 = vld [vmem:[#allocation2 + $0x8] sm:$0xff]  ;;  %v4630_v44 = vld [vmem:[%s5633_s6 + $0xf4] sm:$0xf]  ;;  %v3629_v45 = vld [vmem:[%s5633_s6 + $0xf8] sm:$0xf0]  ;;  %v3636_v50 = vor.u32 %v4633_v39, %v3635_v38  ;;  %s6380_s3 = scalar_lea.vmem [#allocation5], %s5642_s1 }
  0xa3   : > { %1447 = vmatpush.bf16.msra.mxu1 %v3588_v7  ;;  %v3557_v46 = vld [vmem:[%s5633_s6 + $0x68] sm:$0xf0]  ;;  %v3699_v47 = vld [vmem:[%s5633_s6 + $0x180] sm:$0xf]  ;;  %v4649_v48 = vld [vmem:[%s5633_s6 + $0x184] sm:$0xf0]  ;;  %v5782_v49 = vpack.c.bf16 %v933_v40, %v933_v40  ;;  %v3632_v57 = vor.u32 %v4630_v44, %v3629_v45 }
  0xa4   : > { %1472 = vmatpush.bf16.msra.mxu3 %v3724_v13  ;;  %v4646_v51 = vld [vmem:[%s5633_s6 + $0x174] sm:$0xf]  ;;  %v3693_v52 = vld [vmem:[%s5633_s6 + $0x178] sm:$0xf0]  ;;  %v3803_v54 = vld [vmem:[%s5633_s6 + $0x250] sm:$0xf]  ;;  %v3560_v58 = vor.u32 %v4612_v42, %v3557_v46  ;;  %v3700_v59 = vor.u32 %v4649_v48, %v3699_v47 }
  0xa5   : > { %v4675_v55 = vld [vmem:[%s5633_s6 + $0x254] sm:$0xf0]  ;;  %v4610_v56 = vld [vmem:[%s5633_s6 + $0x54] sm:$0xf]  ;;  %v4628_v60 = vld [vmem:[%s5633_s6 + $0xe4] sm:$0xf]  ;;  %v3696_v0 = vor.u32 %v4646_v51, %v3693_v52 }
  0xa6   : > { %1435 = vmatpush.bf16.msra.mxu0 %v3516_v16  ;;  %1460 = vmatpush.bf16.msra.mxu2 %v3652_v20  ;;  %v3621_v61 = vld [vmem:[%s5633_s6 + $0xe8] sm:$0xf0]  ;;  %v935_v62 = vld [vmem:[#allocation2 + $0x20] sm:$0xff]  ;;  %v4644_v4 = vld [vmem:[%s5633_s6 + $0x164] sm:$0xf]  ;;  %v3804_v7 = vor.u32 %v4675_v55, %v3803_v54  ;;  %s6382_s15 = scalar_lea.vmem [#allocation11], %s5642_s1 }
  0xa7   : > { %1448 = vmatpush.bf16.msra.mxu1 %v3580_v21  ;;  %v3549_v63 = vld [vmem:[%s5633_s6 + $0x58] sm:$0xf0]  ;;  %v5793_v1 = vpack.c.bf16 %v935_v62, %v935_v62  ;;  %v936_v3 = vld [vmem:[#allocation2 + $0x10] sm:$0xff]  ;;  %v3795_v8 = vld [vmem:[%s5633_s6 + $0x240] sm:$0xf]  ;;  %v3624_v9 = vor.u32 %v4628_v60, %v3621_v61  ;;  %s6385_s27 = sld [smem:[#allocation40_spill]] }
  0xa8   : > { %1473 = vmatpush.bf16.msra.mxu3 %v3716_v28  ;;  %v934_v2 = vld [vmem:[#allocation2] sm:$0xff]  ;;  %v3685_v5 = vld [vmem:[%s5633_s6 + $0x168] sm:$0xf0]  ;;  %v3552_v10 = vor.u32 %v4610_v56, %v3549_v63  ;;  %v4673_v11 = vld [vmem:[%s5633_s6 + $0x244] sm:$0xf0]  ;;  %v5803_v14 = vpack.c.bf16 %v936_v3, %v936_v3 }
  0xa9   : > { %v5797_v6 = vpack.c.bf16 %v934_v2, %v934_v2  ;;  %v4626_v12 = vld [vmem:[%s5633_s6 + $0xd4] sm:$0xf]  ;;  %v3613_v13 = vld [vmem:[%s5633_s6 + $0xd8] sm:$0xf0]  ;;  %v4608_v15 = vld [vmem:[%s5633_s6 + $0x44] sm:$0xf]  ;;  %v3688_v17 = vor.u32 %v4644_v4, %v3685_v5  ;;  %v3796_v20 = vor.u32 %v4673_v11, %v3795_v8 }
  0xaa   : > { %1436 = vmatpush.bf16.msra.mxu0 %v3508_v32  ;;  %1461 = vmatpush.bf16.msra.mxu2 %v3644_v35  ;;  %v3541_v16 = vld [vmem:[%s5633_s6 + $0x48] sm:$0xf0]  ;;  %v4642_v18 = vld [vmem:[%s5633_s6 + $0x154] sm:$0xf]  ;;  %v3677_v19 = vld [vmem:[%s5633_s6 + $0x158] sm:$0xf0]  ;;  %v3616_v22 = vor.u32 %v4626_v12, %v3613_v13 }
  0xab   : > { %1449 = vmatpush.bf16.msra.mxu1 %v3572_v36  ;;  %v3787_v21 = vld [vmem:[%s5633_s6 + $0x230] sm:$0xf]  ;;  %v3544_v23 = vor.u32 %v4608_v15, %v3541_v16  ;;  %v4671_v24 = vld [vmem:[%s5633_s6 + $0x234] sm:$0xf0]  ;;  %v4624_v25 = vld [vmem:[%s5633_s6 + $0xc4] sm:$0xf]  ;;  %v3680_v29 = vor.u32 %v4642_v18, %v3677_v19 }
  0xac   : > { %1474 = vmatpush.bf16.msra.mxu3 %v3708_v43  ;;  %v3605_v26 = vld [vmem:[%s5633_s6 + $0xc8] sm:$0xf0]  ;;  %v4606_v27 = vld [vmem:[%s5633_s6 + $0x34] sm:$0xf]  ;;  %v3533_v28 = vld [vmem:[%s5633_s6 + $0x38] sm:$0xf0]  ;;  %v3788_v32 = vor.u32 %v4671_v24, %v3787_v21 }
  0xad   : > { %1437 = vmatmul.bf16.vlgmr.msra.gmra.mxu0 %v5782_v49  ;;  %v4640_v30 = vld [vmem:[%s5633_s6 + $0x144] sm:$0xf]  ;;  %v3669_v31 = vld [vmem:[%s5633_s6 + $0x148] sm:$0xf0]  ;;  %v3779_v33 = vld [vmem:[%s5633_s6 + $0x220] sm:$0xf]  ;;  %v3608_v34 = vor.u32 %v4624_v25, %v3605_v26  ;;  %v3536_v35 = vor.u32 %v4606_v27, %v3533_v28 }
  0xae   : > { %1481 = vmatpush.bf16.msrb.mxu0 %v3820_v37  ;;  %1462 = vmatpush.bf16.msra.mxu2 %v3636_v50  ;;  %v4669_v36 = vld [vmem:[%s5633_s6 + $0x224] sm:$0xf0]  ;;  %v4622_v37 = vld [vmem:[%s5633_s6 + $0xb4] sm:$0xf]  ;;  %v3597_v38 = vld [vmem:[%s5633_s6 + $0xb8] sm:$0xf0] }
  0xaf   : > { %1494 = vmatpush.bf16.msrb.mxu1 %v3568_v41  ;;  %v4604_v39 = vld [vmem:[%s5633_s6 + $0x24] sm:$0xf]  ;;  %v3525_v40 = vld [vmem:[%s5633_s6 + $0x28] sm:$0xf0]  ;;  %v3672_v41 = vor.u32 %v4640_v30, %v3669_v31  ;;  %v4638_v42 = vld [vmem:[%s5633_s6 + $0x134] sm:$0xf]  ;;  %v3780_v44 = vor.u32 %v4669_v36, %v3779_v33  ;;  %v3600_v46 = vor.u32 %v4622_v37, %v3597_v38 }
  0xb0   : > { %1475 = vmatpush.bf16.msra.mxu3 %v3700_v59  ;;  %1450 = vmatmul.bf16.vlgmr.msra.gmra.mxu1 %v5797_v6  ;;  %v3661_v43 = vld [vmem:[%s5633_s6 + $0x138] sm:$0xf0]  ;;  %v3771_v45 = vld [vmem:[%s5633_s6 + $0x210] sm:$0xf]  ;;  %v3528_v47 = vor.u32 %v4604_v39, %v3525_v40  ;;  %v4667_v48 = vld [vmem:[%s5633_s6 + $0x214] sm:$0xf0] }
  0xb1   : > { %1463 = vmatmul.bf16.vlgmr.msra.gmra.mxu2 %v5793_v1  ;;  %v4620_v50 = vld [vmem:[%s5633_s6 + $0xa4] sm:$0xf]  ;;  %v3589_v51 = vld [vmem:[%s5633_s6 + $0xa8] sm:$0xf0]  ;;  %v4602_v52 = vld [vmem:[%s5633_s6 + $0x14] sm:$0xf]  ;;  %v3664_v54 = vor.u32 %v4638_v42, %v3661_v43 }
  0xb2   : > { %1482 = vmatpush.bf16.msrb.mxu0 %v3812_v53  ;;  %1507 = vmatpush.bf16.msrb.mxu2 %v3632_v57  ;;  %v3517_v53 = vld [vmem:[%s5633_s6 + $0x18] sm:$0xf0]  ;;  %v3763_v55 = vld [vmem:[%s5633_s6 + $0x200] sm:$0xf]  ;;  %v4636_v56 = vld [vmem:[%s5633_s6 + $0x124] sm:$0xf]  ;;  %v3592_v62 = vor.u32 %v4620_v50, %v3589_v51 }
  0xb3   : > { %1495 = vmatpush.bf16.msrb.mxu1 %v3560_v58  ;;  %1476 = vmatmul.bf16.vlgmr.msra.gmra.mxu3 %v5803_v14  ;;  %v3653_v57 = vld [vmem:[%s5633_s6 + $0x128] sm:$0xf0]  ;;  %v3772_v58 = vor.u32 %v4667_v48, %v3771_v45  ;;  %v4665_v59 = vld [vmem:[%s5633_s6 + $0x204] sm:$0xf0]  ;;  %v4600_v60 = vld [vmem:[%s5633_s6 + $0x4] sm:$0xf]  ;;  %v3520_v63 = vor.u32 %v4602_v52, %v3517_v53 }
  0xb4   : > { %1520 = vmatpush.bf16.msrb.mxu3 %v3696_v0  ;;  %v3509_v61 = vld [vmem:[%s5633_s6 + $0x8] sm:$0xf0]  ;;  %v4618_v0 = vld [vmem:[%s5633_s6 + $0x94] sm:$0xf]  ;;  %v3581_v2 = vld [vmem:[%s5633_s6 + $0x98] sm:$0xf0]  ;;  %v3764_v11 = vor.u32 %v4665_v59, %v3763_v55 }
  0xb5   : > { %v4662_v3 = vld [vmem:[%s5633_s6 + $0x1f4] sm:$0xf]  ;;  %v3757_v4 = vld [vmem:[%s5633_s6 + $0x1f8] sm:$0xf0]  ;;  %v3584_v13 = vor.u32 %v4618_v0, %v3581_v2  ;;  %v3512_v15 = vor.u32 %v4600_v60, %v3509_v61  ;;  %v3573_v18 = vld [vmem:[%s5633_s6 + $0x88] sm:$0xf0] }
  0xb6   : > { %1483 = vmatpush.bf16.msrb.mxu0 %v3804_v7  ;;  %1508 = vmatpush.bf16.msrb.mxu2 %v3624_v9  ;;  %v4678_v5 = vld [vmem:[%s5633_s6 + $0x274] sm:$0xf]  ;;  %v3656_v7 = vor.u32 %v4636_v56, %v3653_v57  ;;  %v3821_v8 = vld [vmem:[%s5633_s6 + $0x278] sm:$0xf0]  ;;  %v3760_v16 = vor.u32 %v4662_v3, %v3757_v4  ;;  %v3749_v21 = vld [vmem:[%s5633_s6 + $0x1e8] sm:$0xf0] }
  0xb7   : > { %1496 = vmatpush.bf16.msrb.mxu1 %v3552_v10  ;;  %v4634_v9 = vld [vmem:[%s5633_s6 + $0x114] sm:$0xf]  ;;  %v3645_v10 = vld [vmem:[%s5633_s6 + $0x118] sm:$0xf0]  ;;  %v3824_v19 = vor.u32 %v4678_v5, %v3821_v8  ;;  %v3813_v25 = vld [vmem:[%s5633_s6 + $0x268] sm:$0xf0] }
  0xb8   : > { %1521 = vmatpush.bf16.msrb.mxu3 %v3688_v17  ;;  %v937_v12 = vld [vmem:[#allocation2 + $0x18] sm:$0xff]  ;;  %v4616_v17 = vld [vmem:[%s5633_s6 + $0x84] sm:$0xf]  ;;  %v3637_v27 = vld [vmem:[%s5633_s6 + $0x108] sm:$0xf0] }
  0xb9   : > { %v5853_v24 = vpack.c.bf16 %v937_v12, %v937_v12  ;;  %v4632_v26 = vld [vmem:[%s5633_s6 + $0x104] sm:$0xf]  ;;  %v3576_v28 = vor.u32 %v4616_v17, %v3573_v18  ;;  %v3883_v30 = vld [vmem:[%s5650_s0 + $0x70] sm:$0xf]  ;;  %v4695_v31 = vld [vmem:[%s5650_s0 + $0x74] sm:$0xf0] }
  0xba   : > { %1484 = vmatpush.bf16.msrb.mxu0 %v3796_v20  ;;  %1509 = vmatpush.bf16.msrb.mxu2 %v3616_v22  ;;  %v4660_v20 = vld [vmem:[%s5633_s6 + $0x1e4] sm:$0xf]  ;;  %v4658_v33 = vld [vmem:[%s5633_s6 + $0x1d4] sm:$0xf]  ;;  %v3640_v36 = vor.u32 %v4632_v26, %v3637_v27  ;;  %v3884_v37 = vor.u32 %v4695_v31, %v3883_v30  ;;  %v3805_v38 = vld [vmem:[%s5633_s6 + $0x258] sm:$0xf0] }
  0xbb   : > { %1497 = vmatpush.bf16.msrb.mxu1 %v3544_v23  ;;  %v4676_v22 = vld [vmem:[%s5633_s6 + $0x264] sm:$0xf]  ;;  %v3648_v23 = vor.u32 %v4634_v9, %v3645_v10  ;;  %v4693_v40 = vld [vmem:[%s5650_s0 + $0x64] sm:$0xf0]  ;;  %v4654_v50 = vld [vmem:[%s5633_s6 + $0x1b4] sm:$0xf] }
  0xbc   : > { %1522 = vmatpush.bf16.msrb.mxu3 %v3680_v29  ;;  %v3752_v29 = vor.u32 %v4660_v20, %v3749_v21  ;;  %v3875_v39 = vld [vmem:[%s5650_s0 + $0x60] sm:$0xf]  ;;  %v3725_v51 = vld [vmem:[%s5633_s6 + $0x1b8] sm:$0xf0]  ;;  %v4670_v52 = vld [vmem:[%s5633_s6 + $0x234] sm:$0xf] }
  0xbd   : > { %v4656_v43 = vld [vmem:[%s5633_s6 + $0x1c4] sm:$0xf]  ;;  %v3876_v45 = vor.u32 %v4693_v40, %v3875_v39  ;;  %v3789_v53 = vld [vmem:[%s5633_s6 + $0x238] sm:$0xf0]  ;;  %v3717_v56 = vld [vmem:[%s5633_s6 + $0x1a8] sm:$0xf0] }
  0xbe   : > { %1485 = vmatpush.bf16.msrb.mxu0 %v3788_v32  ;;  %1510 = vmatpush.bf16.msrb.mxu2 %v3608_v34  ;;  %v3816_v32 = vor.u32 %v4676_v22, %v3813_v25  ;;  %v3741_v34 = vld [vmem:[%s5633_s6 + $0x1d8] sm:$0xf0]  ;;  %v4652_v55 = vld [vmem:[%s5633_s6 + $0x1a4] sm:$0xf]  ;;  %v3781_v57 = vld [vmem:[%s5633_s6 + $0x228] sm:$0xf0] }
  0xbf   : > { %1498 = vmatpush.bf16.msrb.mxu1 %v3536_v35  ;;  %v4674_v35 = vld [vmem:[%s5633_s6 + $0x254] sm:$0xf]  ;;  %v3709_v61 = vld [vmem:[%s5633_s6 + $0x198] sm:$0xf0]  ;;  %v4648_v3 = vld [vmem:[%s5633_s6 + $0x184] sm:$0xf] }
  0xc0   : > { %1523 = vmatpush.bf16.msrb.mxu3 %v3672_v41  ;;  %v3744_v41 = vor.u32 %v4658_v33, %v3741_v34  ;;  %v3808_v42 = vor.u32 %v4674_v35, %v3805_v38  ;;  %v4650_v60 = vld [vmem:[%s5633_s6 + $0x194] sm:$0xf]  ;;  %v3701_v4 = vld [vmem:[%s5633_s6 + $0x188] sm:$0xf0]  ;;  %v4664_v5 = vld [vmem:[%s5633_s6 + $0x204] sm:$0xf] }
  0xc1   : > { %v3712_v0 = vor.u32 %v4650_v60, %v3709_v61  ;;  %v4694_v8 = vld [vmem:[%s5650_s0 + $0x74] sm:$0xf]  ;;  %v3885_v9 = vld [vmem:[%s5650_s0 + $0x78] sm:$0xf0]  ;;  %v3704_v10 = vor.u32 %v4648_v3, %v3701_v4  ;;  %v3867_v17 = vld [vmem:[%s5650_s0 + $0x50] sm:$0xf] }
  0xc2   : > { %1486 = vmatpush.bf16.msrb.mxu0 %v3780_v44  ;;  %1511 = vmatpush.bf16.msrb.mxu2 %v3600_v46  ;;  %v3733_v44 = vld [vmem:[%s5633_s6 + $0x1c8] sm:$0xf0]  ;;  %v4672_v46 = vld [vmem:[%s5633_s6 + $0x244] sm:$0xf]  ;;  %v3888_v12 = vor.u32 %v4694_v8, %v3885_v9  ;;  %v4691_v18 = vld [vmem:[%s5650_s0 + $0x54] sm:$0xf0] }
  0xc3   : > { %1499 = vmatpush.bf16.msrb.mxu1 %v3528_v47  ;;  %v3797_v47 = vld [vmem:[%s5633_s6 + $0x248] sm:$0xf0]  ;;  %v3868_v20 = vor.u32 %v4691_v18, %v3867_v17  ;;  %v3869_v21 = vld [vmem:[%s5650_s0 + $0x58] sm:$0xf0]  ;;  %v3859_v22 = vld [vmem:[%s5650_s0 + $0x40] sm:$0xf] }
  0xc4   : > { %1524 = vmatpush.bf16.msrb.mxu3 %v3664_v54  ;;  %v3800_v48 = vor.u32 %v4672_v46, %v3797_v47  ;;  %v3792_v54 = vor.u32 %v4670_v52, %v3789_v53  ;;  %v4688_v26 = vld [vmem:[%s5650_s0 + $0x44] sm:$0xf]  ;;  %v4686_v30 = vld [vmem:[%s5650_s0 + $0x34] sm:$0xf]  ;;  %v3843_v34 = vld [vmem:[%s5650_s0 + $0x20] sm:$0xf] }
  0xc5   : > { %v4685_v35 = vld [vmem:[%s5650_s0 + $0x24] sm:$0xf0]  ;;  %v3845_v38 = vld [vmem:[%s5650_s0 + $0x28] sm:$0xf0]  ;;  %v3835_v40 = vld [vmem:[%s5650_s0 + $0x10] sm:$0xf] }
  0xc6   : > { %1487 = vmatpush.bf16.msrb.mxu0 %v3772_v58  ;;  %1512 = vmatpush.bf16.msrb.mxu2 %v3592_v62  ;;  %v3720_v58 = vor.u32 %v4652_v55, %v3717_v56  ;;  %v4666_v62 = vld [vmem:[%s5633_s6 + $0x214] sm:$0xf]  ;;  %v3827_v46 = vld [vmem:[%s5650_s0] sm:$0xf]  ;;  %v4681_v47 = vld [vmem:[%s5650_s0 + $0x4] sm:$0xf0] }
  0xc7   : > { %1500 = vmatpush.bf16.msrb.mxu1 %v3520_v63  ;;  %v3773_v63 = vld [vmem:[%s5633_s6 + $0x218] sm:$0xf0]  ;;  %v3947_v53 = vld [vmem:[%s5650_s0 + $0xf0] sm:$0xf]  ;;  %v4710_v55 = vld [vmem:[%s5650_s0 + $0xf4] sm:$0xf] }
  0xc8   : > { %1525 = vmatpush.bf16.msrb.mxu3 %v3656_v7  ;;  %v3776_v2 = vor.u32 %v4666_v62, %v3773_v63  ;;  %v3765_v7 = vld [vmem:[%s5633_s6 + $0x208] sm:$0xf0]  ;;  %v3949_v56 = vld [vmem:[%s5650_s0 + $0xf8] sm:$0xf0]  ;;  %v3941_v62 = vld [vmem:[%s5650_s0 + $0xe8] sm:$0xf0] }
  0xc9   : > { %v5932_v3 = vld [vmem:[%s6380_s3] sm:$0x3]  ;;  %v4706_v4 = vld [vmem:[%s5650_s0 + $0xd4] sm:$0xf] }
  0xca   : > { %1488 = vmatpush.bf16.msrb.mxu0 %v3764_v11  ;;  %1513 = vmatpush.bf16.msrb.mxu2 %v3584_v13  ;;  %v3768_v11 = vor.u32 %v4664_v5, %v3765_v7  ;;  %v4692_v13 = vld [vmem:[%s5650_s0 + $0x64] sm:$0xf]  ;;  %v3933_v5 = vld [vmem:[%s5650_s0 + $0xd8] sm:$0xf0]  ;;  %v1025_v9 = vperm.slane %v5932_v3, 0 }
  0xcb   : > { %1501 = vmatpush.bf16.msrb.mxu1 %v3512_v15  ;;  %v3877_v15 = vld [vmem:[%s5650_s0 + $0x68] sm:$0xf0] }
  0xcc   : > { %1526 = vmatpush.bf16.msrb.mxu3 %v3648_v23  ;;  %v4689_v23 = vld [vmem:[%s5650_s0 + $0x44] sm:$0xf0] }
  0xcd   : > { %1489 = vmatmul.bf16.vlgmr.msrb.gmra.mxu0 %v5853_v24 }
  0xce   : > { %1533 = vmatpush.bf16.msra.mxu0 %v3760_v16  ;;  %1502 = vmatmul.bf16.vlgmr.msrb.gmra.mxu1 %v5782_v49  ;;  %v3736_v49 = vor.u32 %v4656_v43, %v3733_v44  ;;  %v3880_v16 = vor.u32 %v4692_v13, %v3877_v15  ;;  %v3837_v44 = vld [vmem:[%s5650_s0 + $0x18] sm:$0xf0]  ;;  %v4705_v13 = vld [vmem:[%s5650_s0 + $0xc4] sm:$0xf0]  ;;  %v4704_v15 = vld [vmem:[%s5650_s0 + $0xc4] sm:$0xf] }
  0xcf   : > { %1546 = vmatpush.bf16.msra.mxu1 %v3824_v19  ;;  %1514 = vmatpush.bf16.msrb.mxu2 %v3576_v28  ;;  %v4690_v19 = vld [vmem:[%s5650_s0 + $0x54] sm:$0xf]  ;;  %v3851_v28 = vld [vmem:[%s5650_s0 + $0x30] sm:$0xf] }
  0xd0   : > { %1527 = vmatpush.bf16.msrb.mxu3 %v3640_v36  ;;  %v3872_v25 = vor.u32 %v4690_v19, %v3869_v21  ;;  %v4684_v36 = vld [vmem:[%s5650_s0 + $0x24] sm:$0xf] }
  0xd1   : > { %v3848_v39 = vor.u32 %v4684_v36, %v3845_v38  ;;  %v3899_v38 = vld [vmem:[%s5650_s0 + $0x90] sm:$0xf] }
  0xd2   : > { %1534 = vmatpush.bf16.msra.mxu0 %v3752_v29  ;;  %1515 = vmatmul.bf16.vlgmr.msrb.gmra.mxu2 %v5797_v6  ;;  %v3728_v6 = vor.u32 %v4654_v50, %v3725_v51  ;;  %v4687_v29 = vld [vmem:[%s5650_s0 + $0x34] sm:$0xf0]  ;;  %v3828_v50 = vor.u32 %v4681_v47, %v3827_v46  ;;  %v3829_v51 = vld [vmem:[%s5650_s0 + $0x8] sm:$0xf0]  ;;  %v3891_v47 = vld [vmem:[%s5650_s0 + $0x80] sm:$0xf] }
  0xd3   : > { %1761 = vmatpush.bf16.msra.mxu2 %v3884_v37  ;;  %1547 = vmatpush.bf16.msra.mxu1 %v3816_v32  ;;  %v3852_v31 = vor.u32 %v4687_v29, %v3851_v28  ;;  %v3853_v32 = vld [vmem:[%s5650_s0 + $0x38] sm:$0xf0]  ;;  %v3844_v37 = vor.u32 %v4685_v35, %v3843_v34  ;;  %v3907_v29 = vld [vmem:[%s5650_s0 + $0xa0] sm:$0xf] }
  0xd4   : > { %1528 = vmatmul.bf16.vlgmr.msrb.gmra.mxu3 %v5793_v1  ;;  %v4668_v1 = vld [vmem:[%s5633_s6 + $0x224] sm:$0xf]  ;;  %v3856_v33 = vor.u32 %v4686_v30, %v3853_v32  ;;  %v4701_v30 = vld [vmem:[%s5650_s0 + $0xa4] sm:$0xf0]  ;;  %v3909_v32 = vld [vmem:[%s5650_s0 + $0xa8] sm:$0xf0] }
  0xd5   : > { %v3784_v59 = vor.u32 %v4668_v1, %v3781_v57  ;;  %v3952_v1 = vor.u32 %v4710_v55, %v3949_v56  ;;  %v3939_v57 = vld [vmem:[%s5650_s0 + $0xe0] sm:$0xf]  ;;  %v3908_v34 = vor.u32 %v4701_v30, %v3907_v29  ;;  %v4738_v29 = vld [vmem:[%s5657_s2 + $0xd4] sm:$0xf]  ;;  %s6381_s6 = scalar_lea.vmem [#allocation8], %s5642_s1 }
  0xd6   : > { %1535 = vmatpush.bf16.msra.mxu0 %v3744_v41  ;;  %v4683_v41 = vld [vmem:[%s5650_s0 + $0x14] sm:$0xf0] }
  0xd7   : > { %1548 = vmatpush.bf16.msra.mxu1 %v3808_v42  ;;  %1762 = vmatpush.bf16.msra.mxu2 %v3876_v45  ;;  %v4682_v42 = vld [vmem:[%s5650_s0 + $0x14] sm:$0xf]  ;;  %v3836_v43 = vor.u32 %v4683_v41, %v3835_v40 }
  0xd8   : > { %v3840_v45 = vor.u32 %v4682_v42, %v3837_v44  ;;  %v4698_v40 = vld [vmem:[%s5650_s0 + $0x94] sm:$0xf]  ;;  %v3901_v42 = vld [vmem:[%s5650_s0 + $0x98] sm:$0xf0] }
  0xda   : > { %1536 = vmatpush.bf16.msra.mxu0 %v3736_v49  ;;  %v4680_v49 = vld [vmem:[%s5650_s0 + $0x4] sm:$0xf] }
  0xdb   : > { %1549 = vmatpush.bf16.msra.mxu1 %v3800_v48  ;;  %1763 = vmatpush.bf16.msra.mxu2 %v3868_v20  ;;  %v3832_v52 = vor.u32 %v4680_v49, %v3829_v51  ;;  %v4697_v49 = vld [vmem:[%s5650_s0 + $0x84] sm:$0xf0]  ;;  %v3893_v51 = vld [vmem:[%s5650_s0 + $0x88] sm:$0xf0] }
  0xde   : > { %1537 = vmatpush.bf16.msra.mxu0 %v3728_v6  ;;  %v4711_v6 = vld [vmem:[%s5650_s0 + $0xf4] sm:$0xf0] }
  0xdf   : > { %1550 = vmatpush.bf16.msra.mxu1 %v3792_v54  ;;  %v3948_v54 = vor.u32 %v4711_v6, %v3947_v53 }
  0xe1   : > { %1774 = vmatpush.bf16.msra.mxu3 %v3948_v54 }
  0xe2   : > { %1538 = vmatpush.bf16.msra.mxu0 %v3720_v58  ;;  %v4709_v58 = vld [vmem:[%s5650_s0 + $0xe4] sm:$0xf0] }
  0xe3   : > { %1551 = vmatpush.bf16.msra.mxu1 %v3784_v59  ;;  %v4708_v59 = vld [vmem:[%s5650_s0 + $0xe4] sm:$0xf]  ;;  %v3940_v61 = vor.u32 %v4709_v58, %v3939_v57  ;;  %v1026_v57 = vperm.slane %v5932_v3, 1 }
  0xe4   : > { %v3944_v63 = vor.u32 %v4708_v59, %v3941_v62 }
  0xe5   : > { %1775 = vmatpush.bf16.msra.mxu3 %v3940_v61 }
  0xe6   : > { %1539 = vmatpush.bf16.msra.mxu0 %v3712_v0  ;;  %v3931_v0 = vld [vmem:[%s5650_s0 + $0xd0] sm:$0xf] }
  0xe7   : > { %1552 = vmatpush.bf16.msra.mxu1 %v3776_v2  ;;  %v4707_v2 = vld [vmem:[%s5650_s0 + $0xd4] sm:$0xf0] }
  0xe8   : > { %v3932_v8 = vor.u32 %v4707_v2, %v3931_v0 }
  0xea   : > { %1540 = vmatpush.bf16.msra.mxu0 %v3704_v10  ;;  %1776 = vmatpush.bf16.msra.mxu3 %v3932_v8 }
  0xeb   : > { %1553 = vmatpush.bf16.msra.mxu1 %v3768_v11  ;;  %v3936_v11 = vor.u32 %v4706_v4, %v3933_v5 }
  0xed   : > { %1541 = vmatmul.bf16.vlgmr.msra.gmra.mxu0 %v5803_v14  ;;  %v3861_v14 = vld [vmem:[%s5650_s0 + $0x48] sm:$0xf0] }
  0xee   : > { %1787 = vmatpush.bf16.msrb.mxu0 %v3888_v12  ;;  %1554 = vmatmul.bf16.vlgmr.msra.gmra.mxu1 %v5853_v24  ;;  %v3860_v24 = vor.u32 %v4689_v23, %v3859_v22  ;;  %v3864_v27 = vor.u32 %v4688_v26, %v3861_v14  ;;  %v3923_v12 = vld [vmem:[%s5650_s0 + $0xc0] sm:$0xf]  ;;  %v3915_v22 = vld [vmem:[%s5650_s0 + $0xb0] sm:$0xf]  ;;  %v4703_v23 = vld [vmem:[%s5650_s0 + $0xb4] sm:$0xf0] }
  0xef   : > { %1800 = vmatpush.bf16.msrb.mxu1 %v3952_v1  ;;  %v3924_v19 = vor.u32 %v4705_v13, %v3923_v12  ;;  %v3917_v26 = vld [vmem:[%s5650_s0 + $0xb8] sm:$0xf0]  ;;  %v3916_v14 = vor.u32 %v4703_v23, %v3915_v22  ;;  %v4077_v13 = vld [vmem:[%s5657_s2 + $0xf8] sm:$0xf0] }
  0xf0   : > { %1764 = vmatpush.bf16.msra.mxu2 %v3860_v24  ;;  %v4727_v22 = vld [vmem:[%s5657_s2 + $0x74] sm:$0xf0] }
  0xf1   : > { %1777 = vmatpush.bf16.msra.mxu3 %v3924_v19 }
  0xf2   : > { %1788 = vmatpush.bf16.msrb.mxu0 %v3880_v16  ;;  %v3925_v16 = vld [vmem:[%s5650_s0 + $0xc8] sm:$0xf0] }
  0xf3   : > { %1801 = vmatpush.bf16.msrb.mxu1 %v3944_v63  ;;  %v3928_v21 = vor.u32 %v4704_v15, %v3925_v16  ;;  %v4067_v16 = vld [vmem:[%s5657_s2 + $0xe0] sm:$0xf] }
  0xf4   : > { %1765 = vmatpush.bf16.msra.mxu2 %v3852_v31  ;;  %v4700_v31 = vld [vmem:[%s5650_s0 + $0xa4] sm:$0xf] }
  0xf5   : > { %1778 = vmatpush.bf16.msra.mxu3 %v3916_v14  ;;  %v3912_v36 = vor.u32 %v4700_v31, %v3909_v32  ;;  %v4013_v14 = vld [vmem:[%s5657_s2 + $0x78] sm:$0xf0]  ;;  %v4003_v32 = vld [vmem:[%s5657_s2 + $0x60] sm:$0xf] }
  0xf6   : > { %1789 = vmatpush.bf16.msrb.mxu0 %v3872_v25  ;;  %v4702_v25 = vld [vmem:[%s5650_s0 + $0xb4] sm:$0xf]  ;;  %v4061_v31 = vld [vmem:[%s5657_s2 + $0xd8] sm:$0xf0] }
  0xf7   : > { %1802 = vmatpush.bf16.msrb.mxu1 %v3936_v11  ;;  %v3920_v28 = vor.u32 %v4702_v25, %v3917_v26  ;;  %v4742_v11 = vld [vmem:[%s5657_s2 + $0xf4] sm:$0xf] }
  0xf8   : > { %1766 = vmatpush.bf16.msra.mxu2 %v3844_v37  ;;  %v4080_v15 = vor.u32 %v4742_v11, %v4077_v13  ;;  %v4726_v26 = vld [vmem:[%s5657_s2 + $0x74] sm:$0xf]  ;;  %v4027_v11 = vld [vmem:[%s5657_s2 + $0x90] sm:$0xf] }
  0xf9   : > { %1779 = vmatpush.bf16.msra.mxu3 %v3908_v34  ;;  %v4064_v34 = vor.u32 %v4738_v29, %v4061_v31  ;;  %v4730_v13 = vld [vmem:[%s5657_s2 + $0x94] sm:$0xf]  ;;  %v4715_v31 = vld [vmem:[%s5657_s2 + $0x14] sm:$0xf0] }
  0xfa   : > { %1790 = vmatpush.bf16.msrb.mxu0 %v3864_v27 }
  0xfb   : > { %1803 = vmatpush.bf16.msrb.mxu1 %v3928_v21  ;;  %v4011_v21 = vld [vmem:[%s5657_s2 + $0x70] sm:$0xf] }
  0xfc   : > { %1767 = vmatpush.bf16.msra.mxu2 %v3836_v43  ;;  %v3904_v43 = vor.u32 %v4698_v40, %v3901_v42  ;;  %v4012_v25 = vor.u32 %v4727_v22, %v4011_v21  ;;  %v4737_v40 = vld [vmem:[%s5657_s2 + $0xc4] sm:$0xf0]  ;;  %v4053_v42 = vld [vmem:[%s5657_s2 + $0xc8] sm:$0xf0] }
  0xfe   : > { %1791 = vmatpush.bf16.msrb.mxu0 %v3856_v33 }
  0xff   : > { %1804 = vmatpush.bf16.msrb.mxu1 %v3920_v28  ;;  %v4739_v28 = vld [vmem:[%s5657_s2 + $0xd4] sm:$0xf0] }
 0x100   : > { %1768 = vmatpush.bf16.msra.mxu2 %v3828_v50  ;;  %v3892_v50 = vor.u32 %v4697_v49, %v3891_v47  ;;  %v4722_v47 = vld [vmem:[%s5657_s2 + $0x54] sm:$0xf] }
 0x102   : > { %1792 = vmatpush.bf16.msrb.mxu0 %v3848_v39  ;;  %v4699_v39 = vld [vmem:[%s5650_s0 + $0x94] sm:$0xf0] }
 0x103   : > { %1805 = vmatpush.bf16.msrb.mxu1 %v3912_v36  ;;  %v3900_v41 = vor.u32 %v4699_v39, %v3899_v38  ;;  %v4724_v36 = vld [vmem:[%s5657_s2 + $0x64] sm:$0xf]  ;;  %v4051_v38 = vld [vmem:[%s5657_s2 + $0xc0] sm:$0xf] }
 0x104   : > { %2015 = vmatpush.bf16.msrb.mxu2 %v4012_v25 }
 0x105   : > { %1780 = vmatpush.bf16.msra.mxu3 %v3900_v41  ;;  %v4736_v41 = vld [vmem:[%s5657_s2 + $0xc4] sm:$0xf] }
 0x106   : > { %1793 = vmatpush.bf16.msrb.mxu0 %v3840_v45 }
 0x107   : > { %1806 = vmatpush.bf16.msrb.mxu1 %v3904_v43  ;;  %v4052_v43 = vor.u32 %v4737_v40, %v4051_v38  ;;  %v4713_v38 = vld [vmem:[%s5657_s2 + $0x4] sm:$0xf0] }
 0x109   : > { %1781 = vmatpush.bf16.msra.mxu3 %v3892_v50  ;;  %v4043_v50 = vld [vmem:[%s5657_s2 + $0xb0] sm:$0xf] }
 0x10a   : > { %1794 = vmatpush.bf16.msrb.mxu0 %v3832_v52 }
 0x12a   : > { %v1438_v48 = vpop.f32.mrf.mxu0 }
 0x12b   : > { %v1439_v20 = vadd.f32 %v1438_v48, %v1025_v9  ;;  %v4696_v48 = vld [vmem:[%s5650_s0 + $0x84] sm:$0xf]  ;;  %v4075_v9 = vld [vmem:[%s5657_s2 + $0xf0] sm:$0xf]  ;;  %s6383_s0 = scalar_lea.vmem [#allocation14], %s5642_s1  ;;  %s6384_s1 = scalar_lea.vmem [#allocation20], %s5629_s4 }
 0x12c   : > { %v3896_v53 = vor.u32 %v4696_v48, %v3893_v51  ;;  %v3997_v48 = vld [vmem:[%s5657_s2 + $0x58] sm:$0xf0]  ;;  %v4735_v51 = vld [vmem:[%s5657_s2 + $0xb4] sm:$0xf0] }
 0x12d   : > { %v1451_v60 = vpop.f32.mrf.mxu1 }
 0x12e   : > { %v1452_v24 = vadd.f32 %v1451_v60, %v1439_v20  ;;  %1807 = vmatpush.bf16.msrb.mxu1 %v3896_v53  ;;  %v4069_v20 = vld [vmem:[%s5657_s2 + $0xe8] sm:$0xf0]  ;;  %v4734_v53 = vld [vmem:[%s5657_s2 + $0xb4] sm:$0xf] }
 0x132   : > { %v1440_v7 = vpop.f32.mrf.mxu0  ;;  %2054 = vmatpush.bf16.msra.mxu1 %v4080_v15 }
 0x134   : > { %v1464_v10 = vpop.f32.mrf.mxu2 }
 0x135   : > { %v1453_v18 = vpop.f32.mrf.mxu1  ;;  %v1465_v35 = vadd.f32 %v1464_v10, %v1452_v24  ;;  %v4743_v10 = vld [vmem:[%s5657_s2 + $0xf4] sm:$0xf0]  ;;  %v4016_v24 = vor.u32 %v4726_v26, %v4013_v14  ;;  %v4019_v26 = vld [vmem:[%s5657_s2 + $0x80] sm:$0xf]  ;;  %v4729_v14 = vld [vmem:[%s5657_s2 + $0x84] sm:$0xf0] }
 0x136   : > { %v1477_v17 = vpop.f32.mrf.mxu3  ;;  %v4076_v12 = vor.u32 %v4743_v10, %v4075_v9  ;;  %v4740_v18 = vld [vmem:[%s5657_s2 + $0xe4] sm:$0xf] }
 0x137   : > { %v1478_v37 = vadd.f32 %v1477_v17, %v1465_v35  ;;  %v4741_v17 = vld [vmem:[%s5657_s2 + $0xe4] sm:$0xf0]  ;;  %v4072_v23 = vor.u32 %v4740_v18, %v4069_v20  ;;  %2041 = vmatpush.bf16.msra.mxu0 %v4016_v24  ;;  %v3971_v18 = vld [vmem:[%s5657_s2 + $0x20] sm:$0xf]  ;;  %v4716_v20 = vld [vmem:[%s5657_s2 + $0x24] sm:$0xf] }
 0x138   : > { %2028 = vmatpush.bf16.msrb.mxu3 %v4076_v12  ;;  %v4068_v19 = vor.u32 %v4741_v17, %v4067_v16  ;;  %v4731_v12 = vld [vmem:[%s5657_s2 + $0x94] sm:$0xf0]  ;;  %v4029_v16 = vld [vmem:[%s5657_s2 + $0x98] sm:$0xf0]  ;;  %v4728_v24 = vld [vmem:[%s5657_s2 + $0x84] sm:$0xf] }
 0x139   : > { %2055 = vmatpush.bf16.msra.mxu1 %v4072_v23  ;;  %v4028_v15 = vor.u32 %v4731_v12, %v4027_v11  ;;  %v4032_v17 = vor.u32 %v4730_v13, %v4029_v16  ;;  %v3973_v23 = vld [vmem:[%s5657_s2 + $0x28] sm:$0xf0]  ;;  %v4123_v13 = vld [vmem:[%s5664_s16 + $0x50] sm:$0xf]  ;;  %v4754_v16 = vld [vmem:[%s5664_s16 + $0x54] sm:$0xf] }
 0x13a   : > { %v3976_v25 = vor.u32 %v4716_v20, %v3973_v23  ;;  %v4769_v11 = vld [vmem:[%s5664_s16 + $0xc4] sm:$0xf0]  ;;  %v1595_v20 = vld [vmem:[%s6381_s6] sm:$0x3] }
 0x13c   : > { %v1466_v27 = vpop.f32.mrf.mxu2  ;;  %2029 = vmatpush.bf16.msrb.mxu3 %v4068_v19  ;;  %v4717_v19 = vld [vmem:[%s5657_s2 + $0x24] sm:$0xf0] }
 0x13d   : > { %v4059_v27 = vld [vmem:[%s5657_s2 + $0xd0] sm:$0xf]  ;;  %2056 = vmatpush.bf16.msra.mxu1 %v4064_v34  ;;  %v3972_v22 = vor.u32 %v4717_v19, %v3971_v18  ;;  %v3965_v34 = vld [vmem:[%s5657_s2 + $0x18] sm:$0xf0]  ;;  %v4125_v19 = vld [vmem:[%s5664_s16 + $0x58] sm:$0xf0] }
 0x13e   : > { %v1479_v33 = vpop.f32.mrf.mxu3  ;;  %v4060_v30 = vor.u32 %v4739_v28, %v4059_v27  ;;  %v4020_v27 = vor.u32 %v4729_v14, %v4019_v26  ;;  %v4021_v28 = vld [vmem:[%s5657_s2 + $0x88] sm:$0xf0]  ;;  %v4181_v18 = vld [vmem:[%s5664_s16 + $0xc8] sm:$0xf0]  ;;  %v4128_v23 = vor.u32 %v4754_v16, %v4125_v19  ;;  %v1598_v14 = vperm.slane %v1595_v20, 1 }
 0x13f   : > { %v4725_v33 = vld [vmem:[%s5657_s2 + $0x64] sm:$0xf0]  ;;  %v4024_v29 = vor.u32 %v4728_v24, %v4021_v28  ;;  %v1597_v28 = vperm.slane %v1595_v20, 0  ;;  %v4746_v20 = vld [vmem:[%s5664_s16 + $0x14] sm:$0xf] }
 0x140   : > { %v4004_v35 = vor.u32 %v4725_v33, %v4003_v32  ;;  %2030 = vmatpush.bf16.msrb.mxu3 %v4060_v30  ;;  %v3963_v30 = vld [vmem:[%s5657_s2 + $0x10] sm:$0xf]  ;;  %v4714_v32 = vld [vmem:[%s5657_s2 + $0x14] sm:$0xf] }
 0x141   : > { %v3964_v33 = vor.u32 %v4715_v31, %v3963_v30 }
 0x142   : > { %2016 = vmatpush.bf16.msrb.mxu2 %v4004_v35  ;;  %v3968_v35 = vor.u32 %v4714_v32, %v3965_v34 }
 0x144   : > { %2031 = vmatpush.bf16.msrb.mxu3 %v4052_v43 }
 0x14a   : > { %v1490_v44 = vpop.f32.mrf.mxu0 }
 0x14b   : > { %v1491_v45 = vadd.f32 %v1490_v44, %v1478_v37  ;;  %v1503_v46 = vpop.f32.mrf.mxu1  ;;  %v4005_v37 = vld [vmem:[%s5657_s2 + $0x68] sm:$0xf0]  ;;  %v4056_v44 = vor.u32 %v4736_v41, %v4053_v42 }
 0x14c   : > { %v1504_v59 = vadd.f32 %v1503_v46, %v1026_v57  ;;  %v4008_v39 = vor.u32 %v4724_v36, %v4005_v37  ;;  %v4723_v46 = vld [vmem:[%s5657_s2 + $0x54] sm:$0xf0]  ;;  %v3989_v57 = vld [vmem:[%s5657_s2 + $0x48] sm:$0xf0]  ;;  %v3955_v37 = vld [vmem:[%s5657_s2] sm:$0xf] }
 0x14d   : > { %v1559_v52 = vmax.f32 %v1491_v45, 0.0  ;;  %v3995_v45 = vld [vmem:[%s5657_s2 + $0x50] sm:$0xf]  ;;  %2057 = vmatpush.bf16.msra.mxu1 %v4056_v44  ;;  %v3956_v41 = vor.u32 %v4713_v38, %v3955_v37  ;;  %v3957_v42 = vld [vmem:[%s5657_s2 + $0x8] sm:$0xf0] }
 0x14e   : > { %2042 = vmatpush.bf16.msra.mxu0 %v4008_v39  ;;  %v3996_v49 = vor.u32 %v4723_v46, %v3995_v45  ;;  %v4712_v39 = vld [vmem:[%s5657_s2 + $0x4] sm:$0xf]  ;;  %v4203_v44 = vld [vmem:[%s5664_s16 + $0xf0] sm:$0xf]  ;;  %v4775_v45 = vld [vmem:[%s5664_s16 + $0xf4] sm:$0xf0] }
 0x14f   : > { %v1561_v6 = vpack.c.bf16 %v1559_v52, %v1559_v52  ;;  %v4000_v52 = vor.u32 %v4722_v47, %v3997_v48  ;;  %v3960_v43 = vor.u32 %v4712_v39, %v3957_v42  ;;  %v4774_v46 = vld [vmem:[%s5664_s16 + $0xf4] sm:$0xf]  ;;  %v4205_v48 = vld [vmem:[%s5664_s16 + $0xf8] sm:$0xf0]  ;;  %v4171_v39 = vld [vmem:[%s5664_s16 + $0xb0] sm:$0xf] }
 0x150   : > { %2017 = vmatpush.bf16.msrb.mxu2 %v3996_v49  ;;  %v4204_v49 = vor.u32 %v4775_v45, %v4203_v44  ;;  %v4173_v42 = vld [vmem:[%s5664_s16 + $0xb8] sm:$0xf0]  ;;  %v4115_v44 = vld [vmem:[%s5664_s16 + $0x40] sm:$0xf]  ;;  %v4753_v45 = vld [vmem:[%s5664_s16 + $0x44] sm:$0xf0] }
 0x151   : > { %1769 = vmatmul.bf16.vlgmr.msra.gmra.mxu2 %v1561_v6  ;;  %1795 = vmatmul.bf16.vlgmr.msrb.gmra.mxu0 %v1561_v6  ;;  %v4045_v6 = vld [vmem:[%s5657_s2 + $0xb8] sm:$0xf0] }
 0x152   : > { %v1492_v54 = vpop.f32.mrf.mxu0  ;;  %2043 = vmatpush.bf16.msra.mxu0 %v4000_v52  ;;  %v4208_v52 = vor.u32 %v4774_v46, %v4205_v48  ;;  %v4752_v46 = vld [vmem:[%s5664_s16 + $0x44] sm:$0xf]  ;;  %v4163_v48 = vld [vmem:[%s5664_s16 + $0xa0] sm:$0xf] }
 0x153   : > { %v1505_v55 = vpop.f32.mrf.mxu1  ;;  %v3987_v54 = vld [vmem:[%s5657_s2 + $0x40] sm:$0xf] }
 0x154   : > { %v4044_v55 = vor.u32 %v4735_v51, %v4043_v50  ;;  %v4195_v50 = vld [vmem:[%s5664_s16 + $0xe0] sm:$0xf]  ;;  %v4773_v51 = vld [vmem:[%s5664_s16 + $0xe4] sm:$0xf0] }
 0x155   : > { %v1516_v56 = vpop.f32.mrf.mxu2 }
 0x156   : > { %v1517_v61 = vadd.f32 %v1516_v56, %v1504_v59  ;;  %v4721_v56 = vld [vmem:[%s5657_s2 + $0x44] sm:$0xf0]  ;;  %2032 = vmatpush.bf16.msrb.mxu3 %v4044_v55  ;;  %v4196_v55 = vor.u32 %v4773_v51, %v4195_v50  ;;  %v4765_v50 = vld [vmem:[%s5664_s16 + $0xa4] sm:$0xf0] }
 0x157   : > { %v1529_v1 = vpop.f32.mrf.mxu3  ;;  %v3988_v59 = vor.u32 %v4721_v56, %v3987_v54  ;;  %v4139_v54 = vld [vmem:[%s5664_s16 + $0x70] sm:$0xf]  ;;  %v4759_v56 = vld [vmem:[%s5664_s16 + $0x74] sm:$0xf0] }
 0x158   : > { %v1530_v62 = vadd.f32 %v1529_v1, %v1517_v61  ;;  %v4720_v1 = vld [vmem:[%s5657_s2 + $0x44] sm:$0xf]  ;;  %v4733_v61 = vld [vmem:[%s5657_s2 + $0xa4] sm:$0xf0] }
 0x159   : > { %2018 = vmatpush.bf16.msrb.mxu2 %v3988_v59  ;;  %v4140_v59 = vor.u32 %v4759_v56, %v4139_v54  ;;  %v4751_v56 = vld [vmem:[%s5664_s16 + $0x34] sm:$0xf0] }
 0x15d   : > { %v1518_v58 = vpop.f32.mrf.mxu2 }
 0x15e   : > { %v4048_v58 = vor.u32 %v4734_v53, %v4045_v6  ;;  %v4772_v53 = vld [vmem:[%s5664_s16 + $0xe4] sm:$0xf]  ;;  %v4197_v6 = vld [vmem:[%s5664_s16 + $0xe8] sm:$0xf0] }
 0x15f   : > { %v1531_v60 = vpop.f32.mrf.mxu3 }
 0x160   : > { %v4035_v60 = vld [vmem:[%s5657_s2 + $0xa0] sm:$0xf]  ;;  %2058 = vmatpush.bf16.msra.mxu1 %v4048_v58  ;;  %v4200_v58 = vor.u32 %v4772_v53, %v4197_v6  ;;  %v4764_v53 = vld [vmem:[%s5664_s16 + $0xa4] sm:$0xf]  ;;  %v4165_v6 = vld [vmem:[%s5664_s16 + $0xa8] sm:$0xf0] }
 0x161   : > { %v4168_v54 = vor.u32 %v4764_v53, %v4165_v6  ;;  %v4806_v53 = vld [vmem:[%s5672_s17 + $0xf4] sm:$0xf]  ;;  %v4333_v6 = vld [vmem:[%s5672_s17 + $0x104] sm:$0xf0] }
 0x16a   : > { %v1542_v63 = vpop.f32.mrf.mxu0 }
 0x16b   : > { %v1543_v0 = vadd.f32 %v1542_v63, %v1530_v62  ;;  %v1555_v2 = vpop.f32.mrf.mxu1  ;;  %v4732_v62 = vld [vmem:[%s5657_s2 + $0xa4] sm:$0xf]  ;;  %v3992_v63 = vor.u32 %v4720_v1, %v3989_v57  ;;  %v4758_v1 = vld [vmem:[%s5664_s16 + $0x74] sm:$0xf]  ;;  %v4141_v57 = vld [vmem:[%s5664_s16 + $0x78] sm:$0xf0] }
 0x16d   : > { %v1556_v4 = vadd.f32 %v1555_v2, %v1543_v0  ;;  %v4037_v0 = vld [vmem:[%s5657_s2 + $0xa8] sm:$0xf0]  ;;  %v3979_v2 = vld [vmem:[%s5657_s2 + $0x30] sm:$0xf]  ;;  %2044 = vmatpush.bf16.msra.mxu0 %v3992_v63  ;;  %v4770_v63 = vld [vmem:[%s5664_s16 + $0xd4] sm:$0xf] }
 0x16f   : > { %v1560_v5 = vmax.f32 %v1556_v4, 0.0  ;;  %v4719_v4 = vld [vmem:[%s5657_s2 + $0x34] sm:$0xf0] }
 0x170   : > { %v3980_v9 = vor.u32 %v4719_v4, %v3979_v2  ;;  %v4131_v2 = vld [vmem:[%s5664_s16 + $0x60] sm:$0xf]  ;;  %v4757_v4 = vld [vmem:[%s5664_s16 + $0x64] sm:$0xf0] }
 0x171   : > { %v1562_v7 = vpack.c.bf16 %v1560_v5, %v1560_v5  ;;  %v4718_v5 = vld [vmem:[%s5657_s2 + $0x34] sm:$0xf] }
 0x172   : > { %v1544_v8 = vpop.f32.mrf.mxu0  ;;  %2019 = vmatpush.bf16.msrb.mxu2 %v3980_v9 }
 0x173   : > { %v1557_v3 = vpop.f32.mrf.mxu1  ;;  %1782 = vmatmul.bf16.vlgmr.msra.gmra.mxu3 %v1562_v7  ;;  %1808 = vmatmul.bf16.vlgmr.msrb.gmra.mxu1 %v1562_v7  ;;  %v3981_v7 = vld [vmem:[%s5657_s2 + $0x38] sm:$0xf0]  ;;  %v4036_v8 = vor.u32 %v4733_v61, %v4035_v60  ;;  %v4144_v60 = vor.u32 %v4758_v1, %v4141_v57  ;;  %v4187_v61 = vld [vmem:[%s5664_s16 + $0xd0] sm:$0xf]  ;;  %v4750_v1 = vld [vmem:[%s5664_s16 + $0x34] sm:$0xf] }
 0x174   : > { %v4040_v3 = vor.u32 %v4732_v62, %v4037_v0  ;;  %v3984_v10 = vor.u32 %v4718_v5, %v3981_v7  ;;  %v4771_v62 = vld [vmem:[%s5664_s16 + $0xd4] sm:$0xf0]  ;;  %v4189_v0 = vld [vmem:[%s5664_s16 + $0xd8] sm:$0xf0]  ;;  %v4132_v5 = vor.u32 %v4757_v4, %v4131_v2  ;;  %v4756_v7 = vld [vmem:[%s5664_s16 + $0x64] sm:$0xf] }
 0x175   : > { %2033 = vmatpush.bf16.msrb.mxu3 %v4036_v8  ;;  %v4133_v8 = vld [vmem:[%s5664_s16 + $0x68] sm:$0xf0]  ;;  %v4192_v12 = vor.u32 %v4770_v63, %v4189_v0  ;;  %v4762_v63 = vld [vmem:[%s5664_s16 + $0x94] sm:$0xf]  ;;  %v4157_v0 = vld [vmem:[%s5664_s16 + $0x98] sm:$0xf0] }
 0x176   : > { %2059 = vmatpush.bf16.msra.mxu1 %v4040_v3  ;;  %2045 = vmatpush.bf16.msra.mxu0 %v3984_v10  ;;  %v4188_v3 = vor.u32 %v4771_v62, %v4187_v61  ;;  %v4136_v9 = vor.u32 %v4756_v7, %v4133_v8  ;;  %v4179_v10 = vld [vmem:[%s5664_s16 + $0xc0] sm:$0xf]  ;;  %v4763_v61 = vld [vmem:[%s5664_s16 + $0x94] sm:$0xf0]  ;;  %v4160_v2 = vor.u32 %v4762_v63, %v4157_v0  ;;  %v4748_v7 = vld [vmem:[%s5664_s16 + $0x24] sm:$0xf] }
 0x177   : > { %2020 = vmatpush.bf16.msrb.mxu2 %v3972_v22  ;;  %v4099_v4 = vld [vmem:[%s5664_s16 + $0x20] sm:$0xf]  ;;  %v4313_v63 = vld [vmem:[%s5672_s17 + $0xdc] sm:$0xf0]  ;;  %v6124_v0 = vld [vmem:[%s6382_s15] sm:$0x3] }
 0x179   : > { %2034 = vmatpush.bf16.msrb.mxu3 %v4028_v15  ;;  %v4755_v15 = vld [vmem:[%s5664_s16 + $0x54] sm:$0xf0] }
 0x17a   : > { %2060 = vmatpush.bf16.msra.mxu1 %v4032_v17  ;;  %2046 = vmatpush.bf16.msra.mxu0 %v3976_v25  ;;  %v4768_v17 = vld [vmem:[%s5664_s16 + $0xc4] sm:$0xf]  ;;  %v4124_v22 = vor.u32 %v4755_v15, %v4123_v13  ;;  %v4180_v25 = vor.u32 %v4769_v11, %v4179_v10  ;;  %v4147_v10 = vld [vmem:[%s5664_s16 + $0x80] sm:$0xf]  ;;  %v4761_v11 = vld [vmem:[%s5664_s16 + $0x84] sm:$0xf0] }
 0x17b   : > { %2021 = vmatpush.bf16.msrb.mxu2 %v3964_v33  ;;  %v4184_v26 = vor.u32 %v4768_v17, %v4181_v18  ;;  %v4148_v13 = vor.u32 %v4761_v11, %v4147_v10  ;;  %v4149_v15 = vld [vmem:[%s5664_s16 + $0x88] sm:$0xf0]  ;;  %v4091_v17 = vld [vmem:[%s5664_s16 + $0x10] sm:$0xf]  ;;  %v4747_v18 = vld [vmem:[%s5664_s16 + $0x14] sm:$0xf0] }
 0x17c   : > { %v4092_v19 = vor.u32 %v4747_v18, %v4091_v17  ;;  %v4293_v10 = vld [vmem:[%s5672_s17 + $0xb4] sm:$0xf0]  ;;  %v1852_v17 = vperm.slane %v6124_v0, 1 }
 0x17d   : > { %2035 = vmatpush.bf16.msrb.mxu3 %v4020_v27 }
 0x17e   : > { %2061 = vmatpush.bf16.msra.mxu1 %v4024_v29  ;;  %2047 = vmatpush.bf16.msra.mxu0 %v3968_v35 }
 0x17f   : > { %2022 = vmatpush.bf16.msrb.mxu2 %v3956_v41 }
 0x181   : > { %2282 = vmatpush.bf16.msra.mxu3 %v4204_v49  ;;  %v4117_v49 = vld [vmem:[%s5664_s16 + $0x48] sm:$0xf0] }
 0x182   : > { %2048 = vmatpush.bf16.msra.mxu0 %v3960_v43  ;;  %2308 = vmatpush.bf16.msrb.mxu1 %v4208_v52  ;;  %v4120_v51 = vor.u32 %v4752_v46, %v4117_v49  ;;  %v4164_v52 = vor.u32 %v4765_v50, %v4163_v48  ;;  %v4471_v46 = vld [vmem:[%s5672_s17 + $0x208] sm:$0xf]  ;;  %v4841_v49 = vld [vmem:[%s5672_s17 + $0x20c] sm:$0xf]  ;;  %v4473_v48 = vld [vmem:[%s5672_s17 + $0x21c] sm:$0xf0] }
 0x183   : > { %2269 = vmatpush.bf16.msra.mxu2 %v4140_v59  ;;  %v4331_v50 = vld [vmem:[%s5672_s17 + $0xf0] sm:$0xf] }
 0x185   : > { %2283 = vmatpush.bf16.msra.mxu3 %v4196_v55  ;;  %v4107_v55 = vld [vmem:[%s5664_s16 + $0x30] sm:$0xf] }
 0x186   : > { %2295 = vmatpush.bf16.msrb.mxu0 %v4144_v60  ;;  %2309 = vmatpush.bf16.msrb.mxu1 %v4200_v58  ;;  %v4108_v57 = vor.u32 %v4751_v56, %v4107_v55  ;;  %v4109_v58 = vld [vmem:[%s5664_s16 + $0x38] sm:$0xf0]  ;;  %v4155_v60 = vld [vmem:[%s5664_s16 + $0x90] sm:$0xf]  ;;  %v4336_v55 = vor.u32 %v4806_v53, %v4333_v6  ;;  %v4451_v56 = vld [vmem:[%s5672_s17 + $0x1e0] sm:$0xf] }
 0x187   : > { %2270 = vmatpush.bf16.msra.mxu2 %v4132_v5  ;;  %v4112_v59 = vor.u32 %v4750_v1, %v4109_v58  ;;  %v4156_v62 = vor.u32 %v4763_v61, %v4155_v60  ;;  %v4749_v5 = vld [vmem:[%s5664_s16 + $0x24] sm:$0xf0]  ;;  %v4838_v1 = vld [vmem:[%s5672_s17 + $0x1f0] sm:$0xf0]  ;;  %v4311_v58 = vld [vmem:[%s5672_s17 + $0xc8] sm:$0xf] }
 0x188   : > { %v4100_v8 = vor.u32 %v4749_v5, %v4099_v4  ;;  %v4801_v60 = vld [vmem:[%s5672_s17 + $0xcc] sm:$0xf]  ;;  %v4836_v61 = vld [vmem:[%s5672_s17 + $0x1e4] sm:$0xf]  ;;  %v4291_v5 = vld [vmem:[%s5672_s17 + $0xa0] sm:$0xf] }
 0x189   : > { %2284 = vmatpush.bf16.msra.mxu3 %v4188_v3  ;;  %v4101_v3 = vld [vmem:[%s5664_s16 + $0x28] sm:$0xf0]  ;;  %v4316_v4 = vor.u32 %v4801_v60, %v4313_v63  ;;  %v4373_v60 = vld [vmem:[%s5672_s17 + $0x154] sm:$0xf0]  ;;  %v4854_v63 = vld [vmem:[%s5672_s17 + $0x270] sm:$0xf0] }
 0x18a   : > { %2296 = vmatpush.bf16.msrb.mxu0 %v4136_v9  ;;  %2310 = vmatpush.bf16.msrb.mxu1 %v4192_v12  ;;  %v4104_v9 = vor.u32 %v4748_v7, %v4101_v3  ;;  %v4760_v12 = vld [vmem:[%s5664_s16 + $0x84] sm:$0xf]  ;;  %v4798_v3 = vld [vmem:[%s5672_s17 + $0xb0] sm:$0xf0] }
 0x18b   : > { %2271 = vmatpush.bf16.msra.mxu2 %v4124_v22  ;;  %v4152_v16 = vor.u32 %v4760_v12, %v4149_v15  ;;  %v4093_v22 = vld [vmem:[%s5664_s16 + $0x18] sm:$0xf0]  ;;  %v4831_v15 = vld [vmem:[%s5672_s17 + $0x1bc] sm:$0xf]  ;;  %v4292_v18 = vor.u32 %v4798_v3, %v4291_v5 }
 0x18c   : > { %v4431_v12 = vld [vmem:[%s5672_s17 + $0x1b8] sm:$0xf] }
 0x18d   : > { %2285 = vmatpush.bf16.msra.mxu3 %v4180_v25  ;;  %v4083_v25 = vld [vmem:[%s5664_s16] sm:$0xf] }
 0x18e   : > { %2297 = vmatpush.bf16.msrb.mxu0 %v4128_v23  ;;  %2311 = vmatpush.bf16.msrb.mxu1 %v4184_v26  ;;  %v4096_v23 = vor.u32 %v4746_v20, %v4093_v22  ;;  %v4745_v26 = vld [vmem:[%s5664_s16 + $0x4] sm:$0xf0]  ;;  %v4271_v20 = vld [vmem:[%s5672_s17 + $0x78] sm:$0xf] }
 0x192   : > { %2298 = vmatpush.bf16.msrb.mxu0 %v4120_v51  ;;  %v4808_v51 = vld [vmem:[%s5672_s17 + $0x100] sm:$0xf0] }
 0x196   : > { %2299 = vmatpush.bf16.msrb.mxu0 %v4112_v59  ;;  %v4803_v59 = vld [vmem:[%s5672_s17 + $0xd8] sm:$0xf0] }
 0x19a   : > { %2300 = vmatpush.bf16.msrb.mxu0 %v4104_v9  ;;  %v4796_v9 = vld [vmem:[%s5672_s17 + $0xa4] sm:$0xf] }
 0x19e   : > { %2301 = vmatpush.bf16.msrb.mxu0 %v4096_v23  ;;  %v4793_v23 = vld [vmem:[%s5672_s17 + $0x88] sm:$0xf0] }
 0x1ce   : > { %v6009_v21 = vpop.f32.mrf.mxu0 }
 0x1cf   : > { %v1797_v24 = vadd.f32 %v6009_v21, %v1598_v14  ;;  %v4744_v14 = vld [vmem:[%s5664_s16 + $0x4] sm:$0xf] }
 0x1d4   : > { %v6020_v36 = vpop.f32.mrf.mxu2 }
 0x1d5   : > { %v1771_v31 = vadd.f32 %v6020_v36, %v1597_v28  ;;  %v4767_v36 = vld [vmem:[%s5664_s16 + $0xb4] sm:$0xf0] }
 0x1d6   : > { %v1798_v40 = vpop.f32.mrf.mxu0  ;;  %v4172_v41 = vor.u32 %v4767_v36, %v4171_v39  ;;  %v4351_v39 = vld [vmem:[%s5672_s17 + $0x118] sm:$0xf] }
 0x1d7   : > { %v4766_v40 = vld [vmem:[%s5664_s16 + $0xb4] sm:$0xf] }
 0x1d8   : > { %v4176_v43 = vor.u32 %v4766_v40, %v4173_v42  ;;  %2286 = vmatpush.bf16.msra.mxu3 %v4172_v41  ;;  %v4813_v40 = vld [vmem:[%s5672_s17 + $0x128] sm:$0xf0]  ;;  %v4811_v41 = vld [vmem:[%s5672_s17 + $0x11c] sm:$0xf]  ;;  %v4353_v42 = vld [vmem:[%s5672_s17 + $0x12c] sm:$0xf0] }
 0x1da   : > { %2312 = vmatpush.bf16.msrb.mxu1 %v4176_v43 }
 0x1dc   : > { %v1772_v47 = vpop.f32.mrf.mxu2  ;;  %2287 = vmatpush.bf16.msra.mxu3 %v4164_v52  ;;  %v4332_v52 = vor.u32 %v4808_v51, %v4331_v50  ;;  %v4371_v51 = vld [vmem:[%s5672_s17 + $0x140] sm:$0xf] }
 0x1dd   : > { %v4116_v47 = vor.u32 %v4753_v45, %v4115_v44  ;;  %v4352_v44 = vor.u32 %v4813_v40, %v4351_v39  ;;  %v4356_v45 = vor.u32 %v4811_v41, %v4353_v42  ;;  %v4823_v39 = vld [vmem:[%s5672_s17 + $0x178] sm:$0xf0]  ;;  %v4821_v41 = vld [vmem:[%s5672_s17 + $0x16c] sm:$0xf]  ;;  %v4251_v42 = vld [vmem:[%s5672_s17 + $0x50] sm:$0xf] }
 0x1de   : > { %2313 = vmatpush.bf16.msrb.mxu1 %v4168_v54 }
 0x1df   : > { %2272 = vmatpush.bf16.msra.mxu2 %v4116_v47  ;;  %v4843_v47 = vld [vmem:[%s5672_s17 + $0x218] sm:$0xf0] }
 0x1e0   : > { %2288 = vmatpush.bf16.msra.mxu3 %v4156_v62  ;;  %v4472_v54 = vor.u32 %v4843_v47, %v4471_v46  ;;  %v4453_v62 = vld [vmem:[%s5672_s17 + $0x1f4] sm:$0xf0]  ;;  %v4253_v46 = vld [vmem:[%s5672_s17 + $0x64] sm:$0xf0] }
 0x1e1   : > { %v4456_v11 = vor.u32 %v4836_v61, %v4453_v62  ;;  %v4519_v62 = vld [vmem:[%s5672_s17 + $0x260] sm:$0xf] }
 0x1e2   : > { %2314 = vmatpush.bf16.msrb.mxu1 %v4160_v2  ;;  %v4312_v2 = vor.u32 %v4803_v59, %v4311_v58  ;;  %v4816_v59 = vld [vmem:[%s5672_s17 + $0x144] sm:$0xf] }
 0x1e3   : > { %2273 = vmatpush.bf16.msra.mxu2 %v4108_v57  ;;  %v4476_v57 = vor.u32 %v4841_v49, %v4473_v48 }
 0x1e4   : > { %2289 = vmatpush.bf16.msra.mxu3 %v4148_v13  ;;  %v4833_v13 = vld [vmem:[%s5672_s17 + $0x1c8] sm:$0xf0] }
 0x1e5   : > { %v4432_v22 = vor.u32 %v4833_v13, %v4431_v12  ;;  %v4520_v12 = vor.u32 %v4854_v63, %v4519_v62  ;;  %v4359_v13 = vld [vmem:[%s5672_s17 + $0x120] sm:$0xf]  ;;  %v4799_v62 = vld [vmem:[%s5672_s17 + $0xb8] sm:$0xf0]  ;;  %v4797_v63 = vld [vmem:[%s5672_s17 + $0xac] sm:$0xf] }
 0x1e6   : > { %2315 = vmatpush.bf16.msrb.mxu1 %v4152_v16  ;;  %v4433_v16 = vld [vmem:[%s5672_s17 + $0x1cc] sm:$0xf0] }
 0x1e7   : > { %2274 = vmatpush.bf16.msra.mxu2 %v4100_v8  ;;  %v4452_v8 = vor.u32 %v4838_v1, %v4451_v56  ;;  %v4231_v56 = vld [vmem:[%s5672_s17 + $0x28] sm:$0xf]  ;;  %v4783_v1 = vld [vmem:[%s5672_s17 + $0x38] sm:$0xf0] }
 0x1e8   : > { %v4232_v5 = vor.u32 %v4783_v1, %v4231_v56  ;;  %v4834_v56 = vld [vmem:[%s5672_s17 + $0x1d0] sm:$0xf0] }
 0x1eb   : > { %2275 = vmatpush.bf16.msra.mxu2 %v4092_v19  ;;  %v4296_v19 = vor.u32 %v4796_v9, %v4293_v10  ;;  %v4211_v9 = vld [vmem:[%s5672_s17] sm:$0xf]  ;;  %v4778_v10 = vld [vmem:[%s5672_s17 + $0x10] sm:$0xf0] }
 0x1f0   : > { %v1809_v27 = vpop.f32.mrf.mxu1 }
 0x1f1   : > { %v1810_v29 = vadd.f32 %v1809_v27, %v1797_v24  ;;  %v4084_v24 = vor.u32 %v4745_v26, %v4083_v25  ;;  %v4085_v27 = vld [vmem:[%s5664_s16 + $0x8] sm:$0xf0]  ;;  %v4791_v25 = vld [vmem:[%s5672_s17 + $0x7c] sm:$0xf]  ;;  %v4273_v26 = vld [vmem:[%s5672_s17 + $0x8c] sm:$0xf0] }
 0x1f2   : > { %v4088_v28 = vor.u32 %v4744_v14, %v4085_v27  ;;  %v4436_v14 = vor.u32 %v4831_v15, %v4433_v16  ;;  %v4828_v27 = vld [vmem:[%s5672_s17 + $0x1a0] sm:$0xf0]  ;;  %v4814_v15 = vld [vmem:[%s5672_s17 + $0x130] sm:$0xf0] }
 0x1f3   : > { %v1814_v30 = vmax.f32 %v1810_v29, 0.0  ;;  %2276 = vmatpush.bf16.msra.mxu2 %v4084_v24  ;;  %v4511_v29 = vld [vmem:[%s5672_s17 + $0x258] sm:$0xf]  ;;  %v4411_v24 = vld [vmem:[%s5672_s17 + $0x190] sm:$0xf] }
 0x1f4   : > { %2302 = vmatpush.bf16.msrb.mxu0 %v4088_v28 }
 0x1f5   : > { %v1816_v32 = vpack.c.bf16 %v1814_v30, %v1814_v30  ;;  %v4853_v30 = vld [vmem:[%s5672_s17 + $0x268] sm:$0xf0] }
 0x1f6   : > { %v1783_v33 = vpop.f32.mrf.mxu3 }
 0x1f7   : > { %v1784_v34 = vadd.f32 %v1783_v33, %v1771_v31  ;;  %2036 = vmatmul.bf16.vlgmr.msrb.gmra.mxu3 %v1816_v32  ;;  %2062 = vmatmul.bf16.vlgmr.msra.gmra.mxu1 %v1816_v32  ;;  %v4851_v31 = vld [vmem:[%s5672_s17 + $0x25c] sm:$0xf]  ;;  %v4512_v32 = vor.u32 %v4853_v30, %v4511_v29  ;;  %v4513_v33 = vld [vmem:[%s5672_s17 + $0x26c] sm:$0xf0]  ;;  %v4826_v30 = vld [vmem:[%s5672_s17 + $0x194] sm:$0xf] }
 0x1f8   : > { %v1811_v35 = vpop.f32.mrf.mxu1 }
 0x1f9   : > { %v1813_v21 = vmax.f32 %v1784_v34, 0.0  ;;  %v4491_v34 = vld [vmem:[%s5672_s17 + $0x230] sm:$0xf]  ;;  %v4848_v35 = vld [vmem:[%s5672_s17 + $0x240] sm:$0xf0]  ;;  %2862 = vmatpush.bf16.msrb.mxu3 %v4512_v32 }
 0x1fa   : > { %v4492_v36 = vor.u32 %v4848_v35, %v4491_v34  ;;  %v4276_v34 = vor.u32 %v4791_v25, %v4273_v26  ;;  %v4501_v25 = vld [vmem:[%s5672_s17 + $0x24c] sm:$0xf0]  ;;  %v4212_v26 = vor.u32 %v4778_v10, %v4211_v9 }
 0x1fb   : > { %v1815_v37 = vpack.c.bf16 %v1813_v21, %v1813_v21  ;;  %v4516_v21 = vor.u32 %v4851_v31, %v4513_v33  ;;  %v4413_v31 = vld [vmem:[%s5672_s17 + $0x1a4] sm:$0xf0]  ;;  %v4272_v33 = vor.u32 %v4793_v23, %v4271_v20  ;;  %v4849_v20 = vld [vmem:[%s5672_s17 + $0x248] sm:$0xf0]  ;;  %v4421_v9 = vld [vmem:[%s5672_s17 + $0x1ac] sm:$0xf0] }
 0x1fc   : > { %v4416_v40 = vor.u32 %v4826_v30, %v4413_v31  ;;  %v4339_v31 = vld [vmem:[%s5672_s17 + $0xf8] sm:$0xf] }
 0x1fd   : > { %2023 = vmatmul.bf16.vlgmr.msrb.gmra.mxu2 %v1815_v37  ;;  %2049 = vmatmul.bf16.vlgmr.msra.gmra.mxu0 %v1815_v37  ;;  %v4846_v37 = vld [vmem:[%s5672_s17 + $0x234] sm:$0xf] }
 0x1fe   : > { %v1785_v38 = vpop.f32.mrf.mxu3  ;;  %2888 = vmatpush.bf16.msra.mxu1 %v4516_v21  ;;  %2849 = vmatpush.bf16.msrb.mxu2 %v4352_v44  ;;  %v1851_v21 = vperm.slane %v6124_v0, 0  ;;  %v4393_v44 = vld [vmem:[%s5672_s17 + $0x17c] sm:$0xf0]  ;;  %v4852_v0 = vld [vmem:[%s5672_s17 + $0x264] sm:$0xf] }
 0x1ff   : > { %v4493_v38 = vld [vmem:[%s5672_s17 + $0x244] sm:$0xf0]  ;;  %2875 = vmatpush.bf16.msra.mxu0 %v4356_v45  ;;  %2863 = vmatpush.bf16.msrb.mxu3 %v4492_v36  ;;  %v4786_v45 = vld [vmem:[%s5672_s17 + $0x54] sm:$0xf]  ;;  %v4396_v6 = vor.u32 %v4821_v41, %v4393_v44  ;;  %v4341_v41 = vld [vmem:[%s5672_s17 + $0x10c] sm:$0xf0] }
 0x200   : > { %v4496_v43 = vor.u32 %v4846_v37, %v4493_v38  ;;  %v4412_v37 = vor.u32 %v4828_v27, %v4411_v24  ;;  %v4391_v38 = vld [vmem:[%s5672_s17 + $0x168] sm:$0xf]  ;;  %v4213_v24 = vld [vmem:[%s5672_s17 + $0x14] sm:$0xf0]  ;;  %v4360_v27 = vor.u32 %v4814_v15, %v4359_v13  ;;  %v4792_v13 = vld [vmem:[%s5672_s17 + $0x84] sm:$0xf] }
 0x201   : > { %v4392_v48 = vor.u32 %v4823_v39, %v4391_v38  ;;  %v4842_v38 = vld [vmem:[%s5672_s17 + $0x214] sm:$0xf]  ;;  %v4481_v39 = vld [vmem:[%s5672_s17 + $0x224] sm:$0xf0] }
 0x202   : > { %2889 = vmatpush.bf16.msra.mxu1 %v4496_v43  ;;  %2850 = vmatpush.bf16.msrb.mxu2 %v4332_v52  ;;  %v4788_v43 = vld [vmem:[%s5672_s17 + $0x60] sm:$0xf0]  ;;  %v4459_v44 = vld [vmem:[%s5672_s17 + $0x1e8] sm:$0xf] }
 0x203   : > { %2876 = vmatpush.bf16.msra.mxu0 %v4336_v55  ;;  %2864 = vmatpush.bf16.msrb.mxu3 %v4472_v54  ;;  %v4252_v50 = vor.u32 %v4788_v43, %v4251_v42  ;;  %v4256_v54 = vor.u32 %v4786_v45, %v4253_v46  ;;  %v4818_v55 = vld [vmem:[%s5672_s17 + $0x150] sm:$0xf0]  ;;  %v4484_v43 = vor.u32 %v4842_v38, %v4481_v39  ;;  %v4839_v45 = vld [vmem:[%s5672_s17 + $0x1f8] sm:$0xf0] }
 0x204   : > { %v4782_v39 = vld [vmem:[%s5672_s17 + $0x34] sm:$0xf] }
 0x206   : > { %2890 = vmatpush.bf16.msra.mxu1 %v4476_v57  ;;  %2851 = vmatpush.bf16.msrb.mxu2 %v4312_v2  ;;  %v4372_v2 = vor.u32 %v4818_v55, %v4371_v51  ;;  %v4319_v51 = vld [vmem:[%s5672_s17 + $0xd0] sm:$0xf]  ;;  %v4439_v55 = vld [vmem:[%s5672_s17 + $0x1c0] sm:$0xf] }
 0x207   : > { %2877 = vmatpush.bf16.msra.mxu0 %v4316_v4  ;;  %2865 = vmatpush.bf16.msrb.mxu3 %v4452_v8  ;;  %v4521_v4 = vld [vmem:[%s5672_s17 + $0x274] sm:$0xf0]  ;;  %v4233_v8 = vld [vmem:[%s5672_s17 + $0x3c] sm:$0xf0] }
 0x20a   : > { %2891 = vmatpush.bf16.msra.mxu1 %v4456_v11  ;;  %2852 = vmatpush.bf16.msrb.mxu2 %v4292_v18  ;;  %v4376_v11 = vor.u32 %v4816_v59, %v4373_v60  ;;  %v4441_v59 = vld [vmem:[%s5672_s17 + $0x1d4] sm:$0xf0]  ;;  %v4299_v60 = vld [vmem:[%s5672_s17 + $0xa8] sm:$0xf] }
 0x20b   : > { %2878 = vmatpush.bf16.msra.mxu0 %v4296_v19  ;;  %2866 = vmatpush.bf16.msrb.mxu3 %v4432_v22  ;;  %v4499_v19 = vld [vmem:[%s5672_s17 + $0x238] sm:$0xf]  ;;  %v4847_v22 = vld [vmem:[%s5672_s17 + $0x23c] sm:$0xf] }
 0x20c   : > { %v4500_v30 = vor.u32 %v4849_v20, %v4499_v19  ;;  %v4824_v19 = vld [vmem:[%s5672_s17 + $0x180] sm:$0xf0]  ;;  %v4822_v20 = vld [vmem:[%s5672_s17 + $0x174] sm:$0xf] }
 0x20e   : > { %2892 = vmatpush.bf16.msra.mxu1 %v4436_v14  ;;  %2853 = vmatpush.bf16.msrb.mxu2 %v4272_v33  ;;  %v4776_v14 = vld [vmem:[%s5672_s17 + $0x4] sm:$0xf]  ;;  %v4504_v33 = vor.u32 %v4847_v22, %v4501_v25 }
 0x20f   : > { %2879 = vmatpush.bf16.msra.mxu0 %v4276_v34  ;;  %2867 = vmatpush.bf16.msrb.mxu3 %v4412_v37  ;;  %v4216_v34 = vor.u32 %v4776_v14, %v4213_v24  ;;  %v4789_v14 = vld [vmem:[%s5672_s17 + $0x68] sm:$0xf0]  ;;  %v4787_v24 = vld [vmem:[%s5672_s17 + $0x5c] sm:$0xf] }
 0x212   : > { %2893 = vmatpush.bf16.msra.mxu1 %v4416_v40  ;;  %2854 = vmatpush.bf16.msrb.mxu2 %v4252_v50  ;;  %v4807_v40 = vld [vmem:[%s5672_s17 + $0xfc] sm:$0xf] }
 0x213   : > { %2868 = vmatpush.bf16.msrb.mxu3 %v4392_v48  ;;  %2880 = vmatpush.bf16.msra.mxu0 %v4256_v54  ;;  %v4344_v46 = vor.u32 %v4807_v40, %v4341_v41  ;;  %v4460_v48 = vor.u32 %v4839_v45, %v4459_v44  ;;  %v4321_v54 = vld [vmem:[%s5672_s17 + $0xe4] sm:$0xf0]  ;;  %v4777_v44 = vld [vmem:[%s5672_s17 + $0xc] sm:$0xf]  ;;  %v4221_v45 = vld [vmem:[%s5672_s17 + $0x1c] sm:$0xf0] }
 0x214   : > { %v4219_v41 = vld [vmem:[%s5672_s17 + $0x8] sm:$0xf] }
 0x216   : > { %2894 = vmatpush.bf16.msra.mxu1 %v4396_v6  ;;  %2855 = vmatpush.bf16.msrb.mxu2 %v4232_v5  ;;  %v4419_v5 = vld [vmem:[%s5672_s17 + $0x198] sm:$0xf] }
 0x217   : > { %2869 = vmatpush.bf16.msrb.mxu3 %v4372_v2  ;;  %v4300_v2 = vor.u32 %v4799_v62, %v4299_v60  ;;  %v4507_v62 = vld [vmem:[%s5672_s17 + $0x240] sm:$0xf] }
 0x21a   : > { %2895 = vmatpush.bf16.msra.mxu1 %v4376_v11  ;;  %2856 = vmatpush.bf16.msrb.mxu2 %v4212_v26  ;;  %v4279_v11 = vld [vmem:[%s5672_s17 + $0x80] sm:$0xf]  ;;  %v4259_v26 = vld [vmem:[%s5672_s17 + $0x58] sm:$0xf] }
 0x274   : > { %v2063_v7 = vpop.f32.mrf.mxu1 }
 0x27a   : > { %v2037_v28 = vpop.f32.mrf.mxu3  ;;  %v2050_v29 = vpop.f32.mrf.mxu0 }
 0x27b   : > { %v2051_v32 = vadd.f32 %v2050_v29, %v1852_v17  ;;  %v4524_v17 = vor.u32 %v4852_v0, %v4521_v4  ;;  %v4361_v29 = vld [vmem:[%s5672_s17 + $0x134] sm:$0xf0]  ;;  %v4301_v0 = vld [vmem:[%s5672_s17 + $0xbc] sm:$0xf0] }
 0x27c   : > { %v2065_v35 = vpop.f32.mrf.mxu1  ;;  %v4304_v4 = vor.u32 %v4797_v63, %v4301_v0  ;;  %v4850_v63 = vld [vmem:[%s5672_s17 + $0x250] sm:$0xf0] }
 0x27d   : > { %v2064_v36 = vadd.f32 %v2063_v7, %v2051_v32  ;;  %v4781_v7 = vld [vmem:[%s5672_s17 + $0x2c] sm:$0xf]  ;;  %v4479_v35 = vld [vmem:[%s5672_s17 + $0x210] sm:$0xf] }
 0x27e   : > { %v4236_v18 = vor.u32 %v4781_v7, %v4233_v8  ;;  %v4809_v32 = vld [vmem:[%s5672_s17 + $0x108] sm:$0xf0] }
 0x27f   : > { %v2068_v47 = vmax.f32 %v2064_v36, 0.0  ;;  %v4340_v36 = vor.u32 %v4809_v32, %v4339_v31  ;;  %v4829_v7 = vld [vmem:[%s5672_s17 + $0x1a8] sm:$0xf0]  ;;  %v4819_v31 = vld [vmem:[%s5672_s17 + $0x158] sm:$0xf0] }
 0x280   : > { %v2024_v49 = vpop.f32.mrf.mxu2  ;;  %2881 = vmatpush.bf16.msra.mxu0 %v4236_v18  ;;  %v4420_v8 = vor.u32 %v4829_v7, %v4419_v5  ;;  %v4399_v18 = vld [vmem:[%s5672_s17 + $0x170] sm:$0xf]  ;;  %v4817_v32 = vld [vmem:[%s5672_s17 + $0x14c] sm:$0xf]  ;;  %v4367_v5 = vld [vmem:[%s5672_s17 + $0x128] sm:$0xf] }
 0x281   : > { %v2070_v52 = vpack.c.bf16 %v2068_v47, %v2068_v47  ;;  %v2025_v53 = vadd.f32 %v2024_v49, %v1851_v21  ;;  %v4844_v21 = vld [vmem:[%s5672_s17 + $0x220] sm:$0xf0]  ;;  %v4837_v47 = vld [vmem:[%s5672_s17 + $0x1ec] sm:$0xf]  ;;  %v4461_v49 = vld [vmem:[%s5672_s17 + $0x1fc] sm:$0xf0]  ;;  %v4400_v22 = vor.u32 %v4824_v19, %v4399_v18 }
 0x282   : > { %v2039_v57 = vpop.f32.mrf.mxu3  ;;  %v2052_v58 = vpop.f32.mrf.mxu0  ;;  %v4480_v42 = vor.u32 %v4844_v21, %v4479_v35  ;;  %v4464_v50 = vor.u32 %v4837_v47, %v4461_v49  ;;  %v4239_v21 = vld [vmem:[%s5672_s17 + $0x30] sm:$0xf]  ;;  %v2103_v49 = vld [vmem:[%s6383_s0] sm:$0x3] }
 0x283   : > { %v2038_v61 = vadd.f32 %v2037_v28, %v2025_v53  ;;  %2290 = vmatmul.bf16.vlgmr.msra.gmra.mxu3 %v2070_v52  ;;  %2316 = vmatmul.bf16.vlgmr.msrb.gmra.mxu1 %v2070_v52  ;;  %v4812_v28 = vld [vmem:[%s5672_s17 + $0x124] sm:$0xf]  ;;  %v4802_v53 = vld [vmem:[%s5672_s17 + $0xd4] sm:$0xf]  ;;  %v4440_v57 = vor.u32 %v4834_v56, %v4439_v55  ;;  %v4527_v55 = vld [vmem:[%s5672_s17 + $0x268] sm:$0xf] }
 0x284   : > { %2914 = vmatpush.bf16.msra.mxu3 %v4520_v12  ;;  %2940 = vmatpush.bf16.msrb.mxu1 %v4524_v17  ;;  %v4364_v37 = vor.u32 %v4812_v28, %v4361_v29  ;;  %v4804_v52 = vld [vmem:[%s5672_s17 + $0xe0] sm:$0xf0]  ;;  %v4324_v1 = vor.u32 %v4802_v53, %v4321_v54  ;;  %v4794_v12 = vld [vmem:[%s5672_s17 + $0x90] sm:$0xf0]  ;;  %v4261_v28 = vld [vmem:[%s5672_s17 + $0x6c] sm:$0xf0] }
 0x285   : > { %v2067_v3 = vmax.f32 %v2038_v61, 0.0  ;;  %2882 = vmatpush.bf16.msra.mxu0 %v4216_v34  ;;  %v4320_v6 = vor.u32 %v4804_v52, %v4319_v51  ;;  %v4832_v58 = vld [vmem:[%s5672_s17 + $0x1c4] sm:$0xf]  ;;  %v4280_v15 = vor.u32 %v4794_v12, %v4279_v11  ;;  %v4264_v29 = vor.u32 %v4787_v24, %v4261_v28  ;;  %v4381_v34 = vld [vmem:[%s5672_s17 + $0x15c] sm:$0xf0]  ;;  %v4868_v28 = vld [vmem:[%s5681_s18 + $0x60] sm:$0xff] }
 0x286   : > { %v4444_v61 = vor.u32 %v4832_v58, %v4441_v59  ;;  %v4384_v35 = vor.u32 %v4817_v32, %v4381_v34  ;;  %v2105_v54 = vperm.slane %v2103_v49, 0  ;;  %v4855_v56 = vld [vmem:[%s5672_s17 + $0x278] sm:$0xf0]  ;;  %v4871_v59 = vld [vmem:[%s5681_s18 + $0x78] sm:$0xff]  ;;  %v4845_v11 = vld [vmem:[%s5672_s17 + $0x228] sm:$0xf0] }
 0x287   : > { %v2069_v16 = vpack.c.bf16 %v2067_v3, %v2067_v3  ;;  %v4827_v3 = vld [vmem:[%s5672_s17 + $0x19c] sm:$0xf]  ;;  %v4528_v58 = vor.u32 %v4855_v56, %v4527_v55  ;;  %v4805_v24 = vld [vmem:[%s5672_s17 + $0xe8] sm:$0xf0]  ;;  %v4861_v32 = vld [vmem:[%s5681_s18 + $0x28] sm:$0xff] }
 0x288   : > { %v2026_v23 = vpop.f32.mrf.mxu2  ;;  %2915 = vmatpush.bf16.msra.mxu3 %v4500_v30  ;;  %2941 = vmatpush.bf16.msrb.mxu1 %v4504_v33  ;;  %v4424_v10 = vor.u32 %v4827_v3, %v4421_v9  ;;  %v4379_v30 = vld [vmem:[%s5672_s17 + $0x148] sm:$0xf]  ;;  %v4815_v7 = vld [vmem:[%s5672_s17 + $0x138] sm:$0xf0]  ;;  %v4800_v34 = vld [vmem:[%s5672_s17 + $0xc0] sm:$0xf0] }
 0x289   : > { %2277 = vmatmul.bf16.vlgmr.msra.gmra.mxu2 %v2069_v16  ;;  %2303 = vmatmul.bf16.vlgmr.msrb.gmra.mxu0 %v2069_v16  ;;  %v4281_v16 = vld [vmem:[%s5672_s17 + $0x94] sm:$0xf0]  ;;  %v4401_v23 = vld [vmem:[%s5672_s17 + $0x184] sm:$0xf0]  ;;  %v4380_v33 = vor.u32 %v4819_v31, %v4379_v30  ;;  %v4368_v12 = vor.u32 %v4815_v7, %v4367_v5  ;;  %v4835_v30 = vld [vmem:[%s5672_s17 + $0x1d8] sm:$0xf0] }
 0x28a   : > { %2901 = vmatpush.bf16.msra.mxu2 %v4360_v27  ;;  %2927 = vmatpush.bf16.msrb.mxu0 %v4364_v37  ;;  %v4284_v17 = vor.u32 %v4792_v13, %v4281_v16  ;;  %v4404_v25 = vor.u32 %v4822_v20, %v4401_v23  ;;  %v4260_v27 = vor.u32 %v4789_v14, %v4259_v26  ;;  %v4784_v37 = vld [vmem:[%s5672_s17 + $0x40] sm:$0xf0]  ;;  %v4870_v3 = vld [vmem:[%s5681_s18 + $0x70] sm:$0xff]  ;;  %v4869_v20 = vld [vmem:[%s5681_s18 + $0x68] sm:$0xff] }
 0x28b   : > { %v4240_v38 = vor.u32 %v4784_v37, %v4239_v21  ;;  %v4863_v13 = vld [vmem:[%s5681_s18 + $0x38] sm:$0xff]  ;;  %v4862_v26 = vld [vmem:[%s5681_s18 + $0x30] sm:$0xff]  ;;  %v4785_v56 = vld [vmem:[%s5672_s17 + $0x48] sm:$0xf0] }
 0x28c   : > { %2916 = vmatpush.bf16.msra.mxu3 %v4480_v42  ;;  %2942 = vmatpush.bf16.msrb.mxu1 %v4484_v43  ;;  %v4779_v42 = vld [vmem:[%s5672_s17 + $0x18] sm:$0xf0]  ;;  %v4347_v16 = vld [vmem:[%s5672_s17 + $0x100] sm:$0xf]  ;;  %v4840_v23 = vld [vmem:[%s5672_s17 + $0x200] sm:$0xf0] }
 0x28d   : > { %v4220_v43 = vor.u32 %v4779_v42, %v4219_v41  ;;  %v4327_v14 = vld [vmem:[%s5672_s17 + $0xd8] sm:$0xf]  ;;  %v4867_v21 = vld [vmem:[%s5681_s18 + $0x58] sm:$0xff]  ;;  %v4795_v41 = vld [vmem:[%s5672_s17 + $0x98] sm:$0xf0] }
 0x28e   : > { %2902 = vmatpush.bf16.msra.mxu2 %v4340_v36  ;;  %2928 = vmatpush.bf16.msrb.mxu0 %v4344_v46  ;;  %v4241_v36 = vld [vmem:[%s5672_s17 + $0x44] sm:$0xf0]  ;;  %v4224_v46 = vor.u32 %v4777_v44, %v4221_v45  ;;  %v4328_v31 = vor.u32 %v4805_v24, %v4327_v14  ;;  %v4427_v37 = vld [vmem:[%s5672_s17 + $0x1a0] sm:$0xf]  ;;  %v4407_v44 = vld [vmem:[%s5672_s17 + $0x178] sm:$0xf] }
 0x28f   : > { %v4244_v40 = vor.u32 %v4782_v39, %v4241_v36  ;;  %v4860_v36 = vld [vmem:[%s5681_s18 + $0x20] sm:$0xff]  ;;  %v4247_v55 = vld [vmem:[%s5672_s17 + $0x38] sm:$0xf] }
 0x290   : > { %2917 = vmatpush.bf16.msra.mxu3 %v4460_v48  ;;  %2943 = vmatpush.bf16.msrb.mxu1 %v4464_v50  ;;  %v2106_v48 = vperm.slane %v2103_v49, 1  ;;  %v4825_v45 = vld [vmem:[%s5672_s17 + $0x188] sm:$0xf0]  ;;  %v4267_v49 = vld [vmem:[%s5672_s17 + $0x60] sm:$0xf] }
 0x292   : > { %2903 = vmatpush.bf16.msra.mxu2 %v4320_v6  ;;  %2929 = vmatpush.bf16.msrb.mxu0 %v4324_v1 }
 0x294   : > { %2918 = vmatpush.bf16.msra.mxu3 %v4440_v57  ;;  %2944 = vmatpush.bf16.msrb.mxu1 %v4444_v61 }
 0x296   : > { %2904 = vmatpush.bf16.msra.mxu2 %v4300_v2  ;;  %2930 = vmatpush.bf16.msrb.mxu0 %v4304_v4 }
 0x298   : > { %2919 = vmatpush.bf16.msra.mxu3 %v4420_v8  ;;  %2945 = vmatpush.bf16.msrb.mxu1 %v4424_v10  ;;  %v4508_v8 = vor.u32 %v4850_v63, %v4507_v62  ;;  %v4487_v10 = vld [vmem:[%s5672_s17 + $0x218] sm:$0xf]  ;;  %v4780_v62 = vld [vmem:[%s5672_s17 + $0x20] sm:$0xf0] }
 0x299   : > { %v4488_v19 = vor.u32 %v4845_v11, %v4487_v10 }
 0x29a   : > { %2905 = vmatpush.bf16.msra.mxu2 %v4280_v15  ;;  %2931 = vmatpush.bf16.msrb.mxu0 %v4284_v17  ;;  %v4810_v17 = vld [vmem:[%s5672_s17 + $0x110] sm:$0xf0] }
 0x29c   : > { %2920 = vmatpush.bf16.msra.mxu3 %v4400_v22  ;;  %2946 = vmatpush.bf16.msrb.mxu1 %v4404_v25  ;;  %v4467_v22 = vld [vmem:[%s5672_s17 + $0x1f0] sm:$0xf]  ;;  %v4348_v25 = vor.u32 %v4810_v17, %v4347_v16 }
 0x29e   : > { %2906 = vmatpush.bf16.msra.mxu2 %v4260_v27  ;;  %2932 = vmatpush.bf16.msrb.mxu0 %v4264_v29  ;;  %v4468_v27 = vor.u32 %v4840_v23, %v4467_v22  ;;  %v4447_v29 = vld [vmem:[%s5672_s17 + $0x1c8] sm:$0xf]  ;;  %v4961_v22 = vld [vmem:[#allocation2 + $0x8] sm:$0xff] }
 0x2a0   : > { %2921 = vmatpush.bf16.msra.mxu3 %v4380_v33  ;;  %2947 = vmatpush.bf16.msrb.mxu1 %v4384_v35  ;;  %v4307_v33 = vld [vmem:[%s5672_s17 + $0xb0] sm:$0xf]  ;;  %v4448_v35 = vor.u32 %v4835_v30, %v4447_v29  ;;  %v4962_v30 = vld [vmem:[#allocation2 + $0x10] sm:$0xff] }
 0x2a1   : > { %v4308_v39 = vor.u32 %v4800_v34, %v4307_v33 }
 0x2a2   : > { %2907 = vmatpush.bf16.msra.mxu2 %v4240_v38  ;;  %2933 = vmatpush.bf16.msrb.mxu0 %v4244_v40  ;;  %v4830_v38 = vld [vmem:[%s5672_s17 + $0x1b0] sm:$0xf0]  ;;  %v4287_v40 = vld [vmem:[%s5672_s17 + $0x88] sm:$0xf] }
 0x2a3   : > { %v4428_v42 = vor.u32 %v4830_v38, %v4427_v37  ;;  %v4963_v38 = vld [vmem:[#allocation2 + $0x20] sm:$0xff] }
 0x2a6   : > { %2908 = vmatpush.bf16.msra.mxu2 %v4220_v43  ;;  %2934 = vmatpush.bf16.msrb.mxu0 %v4224_v46  ;;  %v4866_v43 = vld [vmem:[%s5681_s18 + $0x50] sm:$0xff]  ;;  %v4288_v46 = vor.u32 %v4795_v41, %v4287_v40 }
 0x300   : > { %v2317_v47 = vpop.f32.mrf.mxu1 }
 0x306   : > { %v2291_v50 = vpop.f32.mrf.mxu3  ;;  %v2304_v51 = vpop.f32.mrf.mxu0 }
 0x307   : > { %v2305_v52 = vadd.f32 %v2304_v51, %v2106_v48  ;;  %v4790_v48 = vld [vmem:[%s5672_s17 + $0x70] sm:$0xf0] }
 0x308   : > { %v2319_v53 = vpop.f32.mrf.mxu1  ;;  %v4865_v51 = vld [vmem:[%s5681_s18 + $0x48] sm:$0xff] }
 0x309   : > { %v2318_v6 = vadd.f32 %v2317_v47, %v2305_v52  ;;  %v4859_v47 = vld [vmem:[%s5681_s18 + $0x18] sm:$0xff]  ;;  %v4387_v52 = vld [vmem:[%s5672_s17 + $0x150] sm:$0xf] }
 0x30a   : > { %v4820_v53 = vld [vmem:[%s5672_s17 + $0x160] sm:$0xf0] }
 0x30b   : > { %v2322_v1 = vmax.f32 %v2318_v6, 0.0  ;;  %v4268_v6 = vor.u32 %v4790_v48, %v4267_v49 }
 0x30c   : > { %v2278_v57 = vpop.f32.mrf.mxu2 }
 0x30d   : > { %v6233_v60 = vpack.c.bf16 %v2322_v1, %v2322_v1  ;;  %v2279_v61 = vadd.f32 %v2278_v57, %v2105_v54  ;;  %v4858_v54 = vld [vmem:[%s5681_s18 + $0x10] sm:$0xff]  ;;  %v4388_v1 = vor.u32 %v4820_v53, %v4387_v52  ;;  %v4864_v57 = vld [vmem:[%s5681_s18 + $0x40] sm:$0xff] }
 0x30e   : > { %v2293_v0 = vpop.f32.mrf.mxu3  ;;  %v2306_v2 = vpop.f32.mrf.mxu0 }
 0x30f   : > { %v2292_v4 = vadd.f32 %v2291_v50, %v2279_v61  ;;  %2870 = vmatmul.bf16.vlgmr.msrb.gmra.mxu3 %v6233_v60  ;;  %2896 = vmatmul.bf16.vlgmr.msra.gmra.mxu1 %v6233_v60  ;;  %v4408_v50 = vor.u32 %v4825_v45, %v4407_v44  ;;  %v4227_v61 = vld [vmem:[%s5672_s17 + $0x10] sm:$0xf]  ;;  %v3147_v44 = vld [vmem:[%s6385_s27] sm:$0xff] }
 0x310   : > { %2966 = vmatpush.bf16.msrb.mxu3 %v4528_v58  ;;  %3124 = vmatpush.bf16.msra.mxu1 %v4871_v59  ;;  %v4248_v58 = vor.u32 %v4785_v56, %v4247_v55  ;;  %v4857_v59 = vld [vmem:[%s5681_s18 + $0x8] sm:$0xff]  ;;  %v4228_v63 = vor.u32 %v4780_v62, %v4227_v61  ;;  %v4856_v0 = vld [vmem:[%s5681_s18] sm:$0xff] }
 0x311   : > { %v2321_v9 = vmax.f32 %v2292_v4, 0.0  ;;  %v2421_v4 = vld [vmem:[%s5674_s28] sm:$0x1f] }
 0x312   : > { %v2424_v5 = vperm.slane %v2421_v4, 1  ;;  %v2423_v11 = vperm.slane %v2421_v4, 0  ;;  %v2426_v23 = vperm.slane %v2421_v4, 3  ;;  %v2425_v29 = vperm.slane %v2421_v4, 2 }
 0x313   : > { %v6245_v15 = vpack.c.bf16 %v2321_v9, %v2321_v9 }
 0x314   : > { %v2280_v18 = vpop.f32.mrf.mxu2  ;;  %2967 = vmatpush.bf16.msrb.mxu3 %v4508_v8  ;;  %3125 = vmatpush.bf16.msra.mxu1 %v4870_v3 }
 0x315   : > { %2857 = vmatmul.bf16.vlgmr.msrb.gmra.mxu2 %v6245_v15  ;;  %2883 = vmatmul.bf16.vlgmr.msra.gmra.mxu0 %v6245_v15 }
 0x316   : > { %2953 = vmatpush.bf16.msrb.mxu2 %v4368_v12  ;;  %3111 = vmatpush.bf16.msra.mxu0 %v4863_v13  ;;  %v4960_v12 = vld [vmem:[#allocation2] sm:$0xff] }
 0x318   : > { %2968 = vmatpush.bf16.msrb.mxu3 %v4488_v19  ;;  %3126 = vmatpush.bf16.msra.mxu1 %v4869_v20 }
 0x31a   : > { %2954 = vmatpush.bf16.msrb.mxu2 %v4348_v25  ;;  %3112 = vmatpush.bf16.msra.mxu0 %v4862_v26 }
 0x31c   : > { %2969 = vmatpush.bf16.msrb.mxu3 %v4468_v27  ;;  %3127 = vmatpush.bf16.msra.mxu1 %v4868_v28 }
 0x31e   : > { %2955 = vmatpush.bf16.msrb.mxu2 %v4328_v31  ;;  %3113 = vmatpush.bf16.msra.mxu0 %v4861_v32 }
 0x31f   : > { %2922 = vmatmul.bf16.vlgmr.msra.gmra.mxu3 %v6233_v60  ;;  %2948 = vmatmul.bf16.vlgmr.msrb.gmra.mxu1 %v6233_v60 }
 0x320   : > { %2970 = vmatpush.bf16.msrb.mxu3 %v4448_v35  ;;  %3128 = vmatpush.bf16.msra.mxu1 %v4867_v21 }
 0x322   : > { %2956 = vmatpush.bf16.msrb.mxu2 %v4308_v39  ;;  %3114 = vmatpush.bf16.msra.mxu0 %v4860_v36  ;;  %v4959_v36 = vld [vmem:[%s6384_s1] ss:$0 sm:$0xff] }
 0x324   : > { %2971 = vmatpush.bf16.msrb.mxu3 %v4428_v42  ;;  %3129 = vmatpush.bf16.msra.mxu1 %v4866_v43 }
 0x325   : > { %2909 = vmatmul.bf16.vlgmr.msra.gmra.mxu2 %v6245_v15  ;;  %2935 = vmatmul.bf16.vlgmr.msrb.gmra.mxu0 %v6245_v15 }
 0x326   : > { %2957 = vmatpush.bf16.msrb.mxu2 %v4288_v46  ;;  %3115 = vmatpush.bf16.msra.mxu0 %v4859_v47  ;;  %v2427_v47 = vperm.slane %v2421_v4, 4 }
 0x328   : > { %2972 = vmatpush.bf16.msrb.mxu3 %v4408_v50  ;;  %3130 = vmatpush.bf16.msra.mxu1 %v4865_v51 }
 0x32a   : > { %2958 = vmatpush.bf16.msrb.mxu2 %v4268_v6  ;;  %3116 = vmatpush.bf16.msra.mxu0 %v4858_v54  ;;  %v4964_v6 = vld [vmem:[#allocation2 + $0x18] sm:$0xff] }
 0x32c   : > { %2973 = vmatpush.bf16.msrb.mxu3 %v4388_v1  ;;  %3131 = vmatpush.bf16.msra.mxu1 %v4864_v57 }
 0x32e   : > { %2959 = vmatpush.bf16.msrb.mxu2 %v4248_v58  ;;  %3117 = vmatpush.bf16.msra.mxu0 %v4857_v59 }
 0x32f   : > { %2974 = vmatmul.bf16.vlgmr.msrb.gmra.mxu3 %v6233_v60  ;;  %3132 = vmatmul.bf16.vlgmr.msra.gmra.mxu1 %v6233_v60 }
 0x332   : > { %2960 = vmatpush.bf16.msrb.mxu2 %v4228_v63  ;;  %3118 = vmatpush.bf16.msra.mxu0 %v4856_v0 }
 0x335   : > { %2961 = vmatmul.bf16.vlgmr.msrb.gmra.mxu2 %v6245_v15  ;;  %3119 = vmatmul.bf16.vlgmr.msra.gmra.mxu0 %v6245_v15 }
 0x38c   : > { %v2897_v2 = vpop.f32.mrf.mxu1 }
 0x392   : > { %v2871_v7 = vpop.f32.mrf.mxu3  ;;  %v2884_v8 = vpop.f32.mrf.mxu0 }
 0x393   : > { %v2885_v3 = vadd.f32 %v2884_v8, %v2424_v5 }
 0x394   : > { %v2899_v9 = vpop.f32.mrf.mxu1 }
 0x395   : > { %v2898_v10 = vadd.f32 %v2897_v2, %v2885_v3 }
 0x397   : > { %v3138_v13 = vsub.f32 %v4960_v12, %v2898_v10 }
 0x398   : > { %v2858_v16 = vpop.f32.mrf.mxu2 }
 0x399   : > { %3143 = vst [vmem:[#allocation2] sm:$0xff] %v3138_v13  ;;  %v2859_v60 = vadd.f32 %v2858_v16, %v2423_v11 }
 0x39a   : > { %v2873_v17 = vpop.f32.mrf.mxu3  ;;  %v2886_v18 = vpop.f32.mrf.mxu0 }
 0x39b   : > { %v2872_v19 = vadd.f32 %v2871_v7, %v2859_v60 }
 0x39c   : > { %v2949_v20 = vpop.f32.mrf.mxu1 }
 0x39d   : > { %v3137_v15 = vsub.f32 %v4961_v22, %v2872_v19 }
 0x39f   : > { %3142 = vst [vmem:[#allocation2 + $0x8] sm:$0xff] %v3137_v15 }
 0x3a0   : > { %v2860_v25 = vpop.f32.mrf.mxu2 }
 0x3a2   : > { %v2923_v26 = vpop.f32.mrf.mxu3  ;;  %v2936_v14 = vpop.f32.mrf.mxu0 }
 0x3a3   : > { %v2937_v24 = vadd.f32 %v2936_v14, %v2426_v23 }
 0x3a4   : > { %v2951_v27 = vpop.f32.mrf.mxu1 }
 0x3a5   : > { %v2950_v28 = vadd.f32 %v2949_v20, %v2937_v24 }
 0x3a7   : > { %v3140_v31 = vsub.f32 %v4962_v30, %v2950_v28 }
 0x3a8   : > { %v2910_v32 = vpop.f32.mrf.mxu2 }
 0x3a9   : > { %3145 = vst [vmem:[#allocation2 + $0x10] sm:$0xff] %v3140_v31  ;;  %v2911_v33 = vadd.f32 %v2910_v32, %v2425_v29 }
 0x3aa   : > { %v2925_v34 = vpop.f32.mrf.mxu3  ;;  %v2938_v35 = vpop.f32.mrf.mxu0 }
 0x3ab   : > { %v2924_v21 = vadd.f32 %v2923_v26, %v2911_v33 }
 0x3ac   : > { %v3133_v37 = vpop.f32.mrf.mxu1 }
 0x3ad   : > { %v3139_v39 = vsub.f32 %v4963_v38, %v2924_v21 }
 0x3af   : > { %3144 = vst [vmem:[#allocation2 + $0x20] sm:$0xff] %v3139_v39 }
 0x3b0   : > { %v2912_v40 = vpop.f32.mrf.mxu2 }
 0x3b2   : > { %v2975_v41 = vpop.f32.mrf.mxu3  ;;  %v3120_v42 = vpop.f32.mrf.mxu0 }
 0x3b3   : > { %v3121_v43 = vadd.f32 %v4959_v36, %v3120_v42 }
 0x3b4   : > { %v3135_v45 = vpop.f32.mrf.mxu1 }
 0x3b5   : > { %v3134_v46 = vadd.f32 %v3133_v37, %v3121_v43 }
 0x3b7   : > { %v3148_v49 = vadd.f32 %v3147_v44, %v3134_v46 }
 0x3b8   : > { %v2962_v48 = vpop.f32.mrf.mxu2 }
 0x3b9   : > { %3149 = vst [vmem:[%s6385_s27] sm:$0xff] %v3148_v49  ;;  %v2963_v50 = vadd.f32 %v2962_v48, %v2427_v47 }
 0x3ba   : > { %v2977_v51 = vpop.f32.mrf.mxu3  ;;  %v3122_v52 = vpop.f32.mrf.mxu0 }
 0x3bb   : > { %v2976_v53 = vadd.f32 %v2975_v41, %v2963_v50 }
 0x3bd   : > { %v3141_v54 = vsub.f32 %v4964_v6, %v2976_v53 }
 0x3bf   : > { %3146 = vst [vmem:[#allocation2 + $0x18] sm:$0xff] %v3141_v54 }
 0x3c0   : > { %v2964_v55 = vpop.f32.mrf.mxu2 }
 0x3c1 PF: > { %s44_s30 = sadd.s32 1, %s5375_s30   ;;  %s6386_s4 = sld [smem:[#allocation29_spill]] }
 0x3c2   : > { %p41_p13 = scmp.ge.s32.totalorder %s44_s30, 10   ;;  %s6387_s27 = sld [smem:[#allocation33_spill]] }
 0x3c3   : > { %s6388_s18 = sld [smem:[#allocation31_spill]]  ;;  %s6389_s25 = smov %s5359_s26 }
 0x3c4   : > { %s6391_s28 = smov %s5371_s29 }
 0x3c5   :  { %43 = sbr.rel (!%p41_p13) target bundleno = 24 (0x18), region = 252 }
 0x3c7   : > { %s6390_s26 = smov %s6386_s4 }
 0x3c9   : > { %s6392_s29 = smov %s6388_s18 }
 0x3ca   :  { %3169 = vsyncpa [#allocation4], 1 }
 0x3cb   :  { %3171 = vsyncpa [#allocation4 + $0x1], 1 }
 0x3cc   :  { %3172 = vsyncpa [#allocation6], 1 }
 0x3cd   :  { %3174 = vsyncpa [#allocation6 + $0x1], 1 }
 0x3ce   :  { %3175 = vsyncpa [#allocation9], 1 }
 0x3cf   :  { %3177 = vsyncpa [#allocation9 + $0x1], 1 }
 0x3d0   :  { %3178 = vsyncpa [#allocation12], 1 }
 0x3d1   :  { %3180 = vsyncpa [#allocation12 + $0x1], 1 }
 0x3d2   :  { %3181 = vsyncpa [#allocation15], 1 }
 0x3d3   :  { %3183 = vsyncpa [#allocation15 + $0x1], 1 }
 0x3d4   :  { %3184 = vsyncpa [#allocation18], 1 }
 0x3d5   :  { %3186 = vsyncpa [#allocation18 + $0x1], 1 }
 0x3d6   :  { %3187 = vsyncpa [#allocation21], 1 }
 0x3d7   :  { %3189 = vsyncpa [#allocation21 + $0x1], 1 }

</bundles_post_ra>
